<compile_context>
chip_gen: v7x
topology: tpu7x:2x2x1
jax: 0.10.0
libtpu: 0.0.40
codegen_flags: <defaults>
</compile_context>

<pallas_src>
import functools

import jax
import jax.numpy as jnp
from jax.experimental import pallas as pl
from jax.experimental.pallas import tpu as pltpu

IN_FEATURES = 12 + 3          # 15
HIDDEN = 64
OUT_FEATURES = 3 * 4          # 12
N_LAYERS = 7                  # 6 hidden Linear(+ReLU) and 1 output Linear


def _round_up(n, m):
    return ((n + m - 1) // m) * m


def _cdiv(a, b):
    return -(-a // b)


def _tpu_config():
    """Generation-aware kernel config (PACK / tile size / VMEM limit / epilogue dtype)."""
    kind = ""
    try:
        kind = jax.devices()[0].device_kind.lower()
    except Exception:
        pass
    if "v5" in kind:
        # v5e: 128x128 MXU (MXU-bound) -> PACK=2 fills one MXU tile exactly; no bf16
        # VALU so keep the f32 epilogue; raise the 16 MiB default scoped VMEM limit.
        return dict(pack=2, tile_rows=8192, vmem_limit_bytes=64 * 1024 * 1024,
                    bf16_epilogue=False, min_grid=1)
    if "v7" in kind:
        # v7x: 256x256 MXU, bf16 VPU, but only 64 MiB VMEM and 2 TensorCores ->
        # smaller tile cap and keep grid length >= 2 so both cores get work.
        return dict(pack=4, tile_rows=16384, vmem_limit_bytes=40 * 1024 * 1024,
                    bf16_epilogue=True, min_grid=2)
    # v6e (default): 256x256 MXU, 128 MiB VMEM, bf16 VPU -> big tiles.
    return dict(pack=4, tile_rows=32768, vmem_limit_bytes=64 * 1024 * 1024,
                bf16_epilogue=True, min_grid=1)


def mlp_kernel(x_ref, *refs, bf16_epilogue):
    """x_ref: (TBP, PACK*15) f32 packed rows. refs = (w1,b1,...,w7,b7, o_ref).

    Weights are PACK-way block-diagonal bf16; biases are lane-tiled f32.
    Matmuls run in bf16 on the MXU with f32 accumulation; the per-layer epilogue
    (bias + ReLU) is bf16 on v6e/v7x and f32 on v5e.
    """
    o_ref = refs[-1]
    wb = refs[:-1]
    h = x_ref[...].astype(jnp.bfloat16)            # cast fused into the kernel
    for i in range(N_LAYERS - 1):
        w = wb[2 * i][...]                         # (.., P_HID) bf16 block-diag
        b = wb[2 * i + 1][...]                     # (1, P_HID) f32
        acc = jnp.dot(h, w, preferred_element_type=jnp.float32)
        if bf16_epilogue:
            h = jnp.maximum(acc.astype(jnp.bfloat16) + b.astype(jnp.bfloat16), 0.0)
        else:
            h = jnp.maximum(acc + b, 0.0).astype(jnp.bfloat16)
    w = wb[-2][...]                                # (P_HID, P_OUT) bf16 block-diag
    b = wb[-1][...]                                # (1, P_OUT) f32
    o_ref[...] = (jnp.dot(h, w, preferred_element_type=jnp.float32) + b).astype(o_ref.dtype)


@functools.partial(jax.jit, static_argnames=(
    "pack", "tile_rows", "vmem_limit_bytes", "bf16_epilogue", "min_grid"))
def mlp_forward(x, packed_params, *, pack, tile_rows, vmem_limit_bytes,
                bf16_epilogue, min_grid):
    """x: (B, 15) f32. packed_params: flat tuple from pack_params(). Returns (B, 12) f32."""
    B = x.shape[0]
    p_in = pack * IN_FEATURES
    p_hid = pack * HIDDEN
    p_out = pack * OUT_FEATURES

    # Packed-row count and batch tile (>= 8 sublanes, multiple of 8).
    bp = _round_up(max(B, pack), pack) // pack
    bp8 = _round_up(bp, 8)
    tbp = min(max(tile_rows // pack, 8), bp8)
    if min_grid > 1 and bp8 >= 8 * min_grid:
        # Keep at least `min_grid` grid steps so dimension_semantics=("parallel",)
        # can spread them across TensorCores (v7x).
        tbp = min(tbp, _round_up(_cdiv(bp8, min_grid), 8))
    bp_pad = _round_up(bp, tbp)

    # Single pad over rows, then a free row-major reshape; bf16 cast happens in-kernel.
    xp = jnp.pad(x, ((0, bp_pad * pack - B), (0, 0))).reshape(bp_pad, p_in)

    grid = (bp_pad // tbp,)
    in_specs = [pl.BlockSpec((tbp, p_in), lambda i: (i, 0))]
    for p in packed_params:
        # Constant index_map -> weights/biases stay resident in VMEM, DMA'd once.
        in_specs.append(pl.BlockSpec(p.shape, lambda i: (0, 0)))
    out_spec = pl.BlockSpec((tbp, p_out), lambda i: (i, 0))

    flops = 2 * bp_pad * (p_in * p_hid + (N_LAYERS - 2) * p_hid * p_hid + p_hid * p_out)
    bytes_accessed = (xp.size * 4 + bp_pad * p_out * 4
                      + sum(int(p.size) * p.dtype.itemsize for p in packed_params))

    out = pl.pallas_call(
        functools.partial(mlp_kernel, bf16_epilogue=bf16_epilogue),
        out_shape=jax.ShapeDtypeStruct((bp_pad, p_out), jnp.float32),
        grid=grid,
        in_specs=in_specs,
        out_specs=out_spec,
        compiler_params=pltpu.CompilerParams(
            dimension_semantics=("parallel",),       # megacore sharding on v7x
            vmem_limit_bytes=vmem_limit_bytes),
        cost_estimate=pl.CostEstimate(flops=flops, transcendentals=0,
                                      bytes_accessed=bytes_accessed),
    )(xp, *packed_params)

    # Un-pack as a pure view (reshape first), then one slice back to B rows.
    return out.reshape(bp_pad * pack, OUT_FEATURES)[:B]


def init_params(key):
    """PyTorch nn.Linear default init: U(-1/sqrt(fan_in), 1/sqrt(fan_in)).

    Weights stored as (fan_in, fan_out) so x @ W == x @ W_torch.T; bias as (1, fan_out).
    """
    dims = [IN_FEATURES] + [HIDDEN] * (N_LAYERS - 1) + [OUT_FEATURES]
    params = []
    for i in range(N_LAYERS):
        fan_in, fan_out = dims[i], dims[i + 1]
        key, kw, kb = jax.random.split(key, 3)
        bound = 1.0 / jnp.sqrt(jnp.float32(fan_in))
        w = jax.random.uniform(kw, (fan_in, fan_out), jnp.float32, -bound, bound)
        b = jax.random.uniform(kb, (1, fan_out), jnp.float32, -bound, bound)
        params += [w, b]
    return tuple(params)


def pack_params(params, pack):
    """Build PACK-way block-diagonal bf16 weights and lane-tiled f32 biases."""
    packed = []
    for i in range(N_LAYERS):
        w = params[2 * i]
        b = params[2 * i + 1]
        fi, fo = w.shape
        wp = jnp.zeros((pack * fi, pack * fo), jnp.float32)
        for j in range(pack):
            wp = wp.at[j * fi:(j + 1) * fi, j * fo:(j + 1) * fo].set(w)
        packed += [wp.astype(jnp.bfloat16),
                   jnp.tile(b, (1, pack)).astype(jnp.float32)]
    return tuple(packed)


def reference_forward_f32(x, params):
    h = x
    for i in range(N_LAYERS - 1):
        h = jnp.maximum(h @ params[2 * i] + params[2 * i + 1], 0.0)
    return h @ params[-2] + params[-1]


def reference_forward_bf16(x, params, bf16_epilogue):
    """Same dtype policy as the kernel: bf16 matmul inputs, f32 accumulation,
    bf16 or f32 epilogue matching the kernel's generation-specific choice."""
    h = x.astype(jnp.bfloat16)
    for i in range(N_LAYERS - 1):
        acc = jnp.dot(h, params[2 * i].astype(jnp.bfloat16),
                      preferred_element_type=jnp.float32)
        if bf16_epilogue:
            h = jnp.maximum(acc.astype(jnp.bfloat16)
                            + params[2 * i + 1].astype(jnp.bfloat16), 0.0)
        else:
            h = jnp.maximum(acc + params[2 * i + 1], 0.0).astype(jnp.bfloat16)
    return jnp.dot(h, params[-2].astype(jnp.bfloat16),
                   preferred_element_type=jnp.float32) + params[-1]


if __name__ == "__main__":
    cfg = _tpu_config()

    key = jax.random.PRNGKey(0)
    key, kx = jax.random.split(key)
    B = 10                                   # deliberately not a multiple of PACK / 8
    x = jax.random.normal(kx, (B, IN_FEATURES), jnp.float32)
    params = init_params(key)
    packed = pack_params(params, cfg["pack"])

    out = mlp_forward(x, packed,
                      pack=cfg["pack"],
                      tile_rows=cfg["tile_rows"],
                      vmem_limit_bytes=cfg["vmem_limit_bytes"],
                      bf16_epilogue=cfg["bf16_epilogue"],
                      min_grid=cfg["min_grid"])
    out = jax.block_until_ready(out)
    assert out.shape == (B, OUT_FEATURES), out.shape

    ref_bf16 = reference_forward_bf16(x, params, cfg["bf16_epilogue"])
    ref_f32 = reference_forward_f32(x, params)
    assert jnp.allclose(out, ref_bf16, atol=2e-3, rtol=2e-3), "mismatch vs bf16 reference"
    assert jnp.allclose(out, ref_f32, atol=1e-1, rtol=1e-1), "mismatch vs f32 reference"
    print("KERNEL_OK")
</pallas_src>

<mosaic_0001>
module attributes {stable_mosaic.version = 11 : i64} {
  func.func @mlp_kernel(%arg0: i32, %arg1: memref<8x60xf32, #tpu.memory_space<vmem>>, %arg2: memref<60x256xbf16, #tpu.memory_space<vmem>>, %arg3: memref<1x256xf32, #tpu.memory_space<vmem>>, %arg4: memref<256x256xbf16, #tpu.memory_space<vmem>>, %arg5: memref<1x256xf32, #tpu.memory_space<vmem>>, %arg6: memref<256x256xbf16, #tpu.memory_space<vmem>>, %arg7: memref<1x256xf32, #tpu.memory_space<vmem>>, %arg8: memref<256x256xbf16, #tpu.memory_space<vmem>>, %arg9: memref<1x256xf32, #tpu.memory_space<vmem>>, %arg10: memref<256x256xbf16, #tpu.memory_space<vmem>>, %arg11: memref<1x256xf32, #tpu.memory_space<vmem>>, %arg12: memref<256x256xbf16, #tpu.memory_space<vmem>>, %arg13: memref<1x256xf32, #tpu.memory_space<vmem>>, %arg14: memref<256x48xbf16, #tpu.memory_space<vmem>>, %arg15: memref<1x48xf32, #tpu.memory_space<vmem>>, %arg16: memref<8x48xf32, #tpu.memory_space<vmem>>) attributes {dimension_semantics = [#tpu.dimension_semantics<parallel>], iteration_bounds = array<i64: 1>, scalar_prefetch = 0 : i64, scratch_operands = 0 : i64, tpu.core_type = #tpu.core_type<tc>, window_params = [{transform_indices = @transform_0, window_bounds = array<i64: 8, 60>}, {pipeline_mode = #tpu.pipeline_mode<synchronous>, transform_indices = @transform_1, window_bounds = array<i64: 60, 256>}, {pipeline_mode = #tpu.pipeline_mode<synchronous>, transform_indices = @transform_2, window_bounds = array<i64: 1, 256>}, {pipeline_mode = #tpu.pipeline_mode<synchronous>, transform_indices = @transform_3, window_bounds = array<i64: 256, 256>}, {pipeline_mode = #tpu.pipeline_mode<synchronous>, transform_indices = @transform_4, window_bounds = array<i64: 1, 256>}, {pipeline_mode = #tpu.pipeline_mode<synchronous>, transform_indices = @transform_5, window_bounds = array<i64: 256, 256>}, {pipeline_mode = #tpu.pipeline_mode<synchronous>, transform_indices = @transform_6, window_bounds = array<i64: 1, 256>}, {pipeline_mode = #tpu.pipeline_mode<synchronous>, transform_indices = @transform_7, window_bounds = array<i64: 256, 256>}, {pipeline_mode = #tpu.pipeline_mode<synchronous>, transform_indices = @transform_8, window_bounds = array<i64: 1, 256>}, {pipeline_mode = #tpu.pipeline_mode<synchronous>, transform_indices = @transform_9, window_bounds = array<i64: 256, 256>}, {pipeline_mode = #tpu.pipeline_mode<synchronous>, transform_indices = @transform_10, window_bounds = array<i64: 1, 256>}, {pipeline_mode = #tpu.pipeline_mode<synchronous>, transform_indices = @transform_11, window_bounds = array<i64: 256, 256>}, {pipeline_mode = #tpu.pipeline_mode<synchronous>, transform_indices = @transform_12, window_bounds = array<i64: 1, 256>}, {pipeline_mode = #tpu.pipeline_mode<synchronous>, transform_indices = @transform_13, window_bounds = array<i64: 256, 48>}, {pipeline_mode = #tpu.pipeline_mode<synchronous>, transform_indices = @transform_14, window_bounds = array<i64: 1, 48>}, {transform_indices = @transform_15, window_bounds = array<i64: 8, 48>}]} {
    %c0 = arith.constant 0 : index
    %c0_0 = arith.constant 0 : index
    %0 = vector.load %arg1[%c0, %c0_0] : memref<8x60xf32, #tpu.memory_space<vmem>>, vector<8x60xf32>
    %1 = arith.truncf %0 : vector<8x60xf32> to vector<8x60xbf16>
    %c0_1 = arith.constant 0 : index
    %c0_2 = arith.constant 0 : index
    %2 = vector.load %arg2[%c0_1, %c0_2] : memref<60x256xbf16, #tpu.memory_space<vmem>>, vector<60x256xbf16>
    %c0_3 = arith.constant 0 : index
    %c0_4 = arith.constant 0 : index
    %3 = vector.load %arg3[%c0_3, %c0_4] : memref<1x256xf32, #tpu.memory_space<vmem>>, vector<1x256xf32>
    %cst = arith.constant dense<0.000000e+00> : vector<8x256xf32>
    %4 = tpu.matmul %1, %2, %cst {dimension_numbers = #tpu.dot_dimension_numbers<[1], [0], [0], [1], [0, 0, 1, 1], [], []>} : vector<8x60xbf16>, vector<60x256xbf16>, vector<8x256xf32> -> vector<8x256xf32>
    %5 = arith.truncf %4 : vector<8x256xf32> to vector<8x256xbf16>
    %6 = arith.truncf %3 : vector<1x256xf32> to vector<1x256xbf16>
    %7 = vector.broadcast %6 : vector<1x256xbf16> to vector<8x256xbf16>
    %8 = arith.addf %5, %7 : vector<8x256xbf16>
    %cst_5 = arith.constant 0.000000e+00 : bf16
    %9 = vector.broadcast %cst_5 : bf16 to vector<8x256xbf16>
    %10 = arith.maximumf %8, %9 : vector<8x256xbf16>
    %c0_6 = arith.constant 0 : index
    %c0_7 = arith.constant 0 : index
    %11 = vector.load %arg4[%c0_6, %c0_7] : memref<256x256xbf16, #tpu.memory_space<vmem>>, vector<256x256xbf16>
    %c0_8 = arith.constant 0 : index
    %c0_9 = arith.constant 0 : index
    %12 = vector.load %arg5[%c0_8, %c0_9] : memref<1x256xf32, #tpu.memory_space<vmem>>, vector<1x256xf32>
    %cst_10 = arith.constant dense<0.000000e+00> : vector<8x256xf32>
    %13 = tpu.matmul %10, %11, %cst_10 {dimension_numbers = #tpu.dot_dimension_numbers<[1], [0], [0], [1], [0, 0, 1, 1], [], []>} : vector<8x256xbf16>, vector<256x256xbf16>, vector<8x256xf32> -> vector<8x256xf32>
    %14 = arith.truncf %13 : vector<8x256xf32> to vector<8x256xbf16>
    %15 = arith.truncf %12 : vector<1x256xf32> to vector<1x256xbf16>
    %16 = vector.broadcast %15 : vector<1x256xbf16> to vector<8x256xbf16>
    %17 = arith.addf %14, %16 : vector<8x256xbf16>
    %cst_11 = arith.constant 0.000000e+00 : bf16
    %18 = vector.broadcast %cst_11 : bf16 to vector<8x256xbf16>
    %19 = arith.maximumf %17, %18 : vector<8x256xbf16>
    %c0_12 = arith.constant 0 : index
    %c0_13 = arith.constant 0 : index
    %20 = vector.load %arg6[%c0_12, %c0_13] : memref<256x256xbf16, #tpu.memory_space<vmem>>, vector<256x256xbf16>
    %c0_14 = arith.constant 0 : index
    %c0_15 = arith.constant 0 : index
    %21 = vector.load %arg7[%c0_14, %c0_15] : memref<1x256xf32, #tpu.memory_space<vmem>>, vector<1x256xf32>
    %cst_16 = arith.constant dense<0.000000e+00> : vector<8x256xf32>
    %22 = tpu.matmul %19, %20, %cst_16 {dimension_numbers = #tpu.dot_dimension_numbers<[1], [0], [0], [1], [0, 0, 1, 1], [], []>} : vector<8x256xbf16>, vector<256x256xbf16>, vector<8x256xf32> -> vector<8x256xf32>
    %23 = arith.truncf %22 : vector<8x256xf32> to vector<8x256xbf16>
    %24 = arith.truncf %21 : vector<1x256xf32> to vector<1x256xbf16>
    %25 = vector.broadcast %24 : vector<1x256xbf16> to vector<8x256xbf16>
    %26 = arith.addf %23, %25 : vector<8x256xbf16>
    %cst_17 = arith.constant 0.000000e+00 : bf16
    %27 = vector.broadcast %cst_17 : bf16 to vector<8x256xbf16>
    %28 = arith.maximumf %26, %27 : vector<8x256xbf16>
    %c0_18 = arith.constant 0 : index
    %c0_19 = arith.constant 0 : index
    %29 = vector.load %arg8[%c0_18, %c0_19] : memref<256x256xbf16, #tpu.memory_space<vmem>>, vector<256x256xbf16>
    %c0_20 = arith.constant 0 : index
    %c0_21 = arith.constant 0 : index
    %30 = vector.load %arg9[%c0_20, %c0_21] : memref<1x256xf32, #tpu.memory_space<vmem>>, vector<1x256xf32>
    %cst_22 = arith.constant dense<0.000000e+00> : vector<8x256xf32>
    %31 = tpu.matmul %28, %29, %cst_22 {dimension_numbers = #tpu.dot_dimension_numbers<[1], [0], [0], [1], [0, 0, 1, 1], [], []>} : vector<8x256xbf16>, vector<256x256xbf16>, vector<8x256xf32> -> vector<8x256xf32>
    %32 = arith.truncf %31 : vector<8x256xf32> to vector<8x256xbf16>
    %33 = arith.truncf %30 : vector<1x256xf32> to vector<1x256xbf16>
    %34 = vector.broadcast %33 : vector<1x256xbf16> to vector<8x256xbf16>
    %35 = arith.addf %32, %34 : vector<8x256xbf16>
    %cst_23 = arith.constant 0.000000e+00 : bf16
    %36 = vector.broadcast %cst_23 : bf16 to vector<8x256xbf16>
    %37 = arith.maximumf %35, %36 : vector<8x256xbf16>
    %c0_24 = arith.constant 0 : index
    %c0_25 = arith.constant 0 : index
    %38 = vector.load %arg10[%c0_24, %c0_25] : memref<256x256xbf16, #tpu.memory_space<vmem>>, vector<256x256xbf16>
    %c0_26 = arith.constant 0 : index
    %c0_27 = arith.constant 0 : index
    %39 = vector.load %arg11[%c0_26, %c0_27] : memref<1x256xf32, #tpu.memory_space<vmem>>, vector<1x256xf32>
    %cst_28 = arith.constant dense<0.000000e+00> : vector<8x256xf32>
    %40 = tpu.matmul %37, %38, %cst_28 {dimension_numbers = #tpu.dot_dimension_numbers<[1], [0], [0], [1], [0, 0, 1, 1], [], []>} : vector<8x256xbf16>, vector<256x256xbf16>, vector<8x256xf32> -> vector<8x256xf32>
    %41 = arith.truncf %40 : vector<8x256xf32> to vector<8x256xbf16>
    %42 = arith.truncf %39 : vector<1x256xf32> to vector<1x256xbf16>
    %43 = vector.broadcast %42 : vector<1x256xbf16> to vector<8x256xbf16>
    %44 = arith.addf %41, %43 : vector<8x256xbf16>
    %cst_29 = arith.constant 0.000000e+00 : bf16
    %45 = vector.broadcast %cst_29 : bf16 to vector<8x256xbf16>
    %46 = arith.maximumf %44, %45 : vector<8x256xbf16>
    %c0_30 = arith.constant 0 : index
    %c0_31 = arith.constant 0 : index
    %47 = vector.load %arg12[%c0_30, %c0_31] : memref<256x256xbf16, #tpu.memory_space<vmem>>, vector<256x256xbf16>
    %c0_32 = arith.constant 0 : index
    %c0_33 = arith.constant 0 : index
    %48 = vector.load %arg13[%c0_32, %c0_33] : memref<1x256xf32, #tpu.memory_space<vmem>>, vector<1x256xf32>
    %cst_34 = arith.constant dense<0.000000e+00> : vector<8x256xf32>
    %49 = tpu.matmul %46, %47, %cst_34 {dimension_numbers = #tpu.dot_dimension_numbers<[1], [0], [0], [1], [0, 0, 1, 1], [], []>} : vector<8x256xbf16>, vector<256x256xbf16>, vector<8x256xf32> -> vector<8x256xf32>
    %50 = arith.truncf %49 : vector<8x256xf32> to vector<8x256xbf16>
    %51 = arith.truncf %48 : vector<1x256xf32> to vector<1x256xbf16>
    %52 = vector.broadcast %51 : vector<1x256xbf16> to vector<8x256xbf16>
    %53 = arith.addf %50, %52 : vector<8x256xbf16>
    %cst_35 = arith.constant 0.000000e+00 : bf16
    %54 = vector.broadcast %cst_35 : bf16 to vector<8x256xbf16>
    %55 = arith.maximumf %53, %54 : vector<8x256xbf16>
    %c0_36 = arith.constant 0 : index
    %c0_37 = arith.constant 0 : index
    %56 = vector.load %arg14[%c0_36, %c0_37] : memref<256x48xbf16, #tpu.memory_space<vmem>>, vector<256x48xbf16>
    %c0_38 = arith.constant 0 : index
    %c0_39 = arith.constant 0 : index
    %57 = vector.load %arg15[%c0_38, %c0_39] : memref<1x48xf32, #tpu.memory_space<vmem>>, vector<1x48xf32>
    %cst_40 = arith.constant dense<0.000000e+00> : vector<8x48xf32>
    %58 = tpu.matmul %55, %56, %cst_40 {dimension_numbers = #tpu.dot_dimension_numbers<[1], [0], [0], [1], [0, 0, 1, 1], [], []>} : vector<8x256xbf16>, vector<256x48xbf16>, vector<8x48xf32> -> vector<8x48xf32>
    %59 = vector.broadcast %57 : vector<1x48xf32> to vector<8x48xf32>
    %60 = arith.addf %58, %59 : vector<8x48xf32>
    %c0_41 = arith.constant 0 : index
    %c0_42 = arith.constant 0 : index
    %61 = vector.load %arg16[%c0_41, %c0_42] : memref<8x48xf32, #tpu.memory_space<vmem>>, vector<8x48xf32>
    tpu.vector_store %arg16[%c0_41, %c0_42], %60 {strides = array<i32>} : memref<8x48xf32, #tpu.memory_space<vmem>>, vector<8x48xf32>,
    return
  }
  func.func @transform_0(%arg0: i32) -> (i32, i32) {
    %c0_i32 = arith.constant 0 : i32
    %c0_i32_0 = arith.constant 0 : i32
    return %arg0, %c0_i32 : i32, i32
  }
  func.func @transform_1(%arg0: i32) -> (i32, i32) {
    %c0_i32 = arith.constant 0 : i32
    %c0_i32_0 = arith.constant 0 : i32
    %c0_i32_1 = arith.constant 0 : i32
    return %c0_i32, %c0_i32_0 : i32, i32
  }
  func.func @transform_2(%arg0: i32) -> (i32, i32) {
    %c0_i32 = arith.constant 0 : i32
    %c0_i32_0 = arith.constant 0 : i32
    %c0_i32_1 = arith.constant 0 : i32
    return %c0_i32, %c0_i32_0 : i32, i32
  }
  func.func @transform_3(%arg0: i32) -> (i32, i32) {
    %c0_i32 = arith.constant 0 : i32
    %c0_i32_0 = arith.constant 0 : i32
    %c0_i32_1 = arith.constant 0 : i32
    return %c0_i32, %c0_i32_0 : i32, i32
  }
  func.func @transform_4(%arg0: i32) -> (i32, i32) {
    %c0_i32 = arith.constant 0 : i32
    %c0_i32_0 = arith.constant 0 : i32
    %c0_i32_1 = arith.constant 0 : i32
    return %c0_i32, %c0_i32_0 : i32, i32
  }
  func.func @transform_5(%arg0: i32) -> (i32, i32) {
    %c0_i32 = arith.constant 0 : i32
    %c0_i32_0 = arith.constant 0 : i32
    %c0_i32_1 = arith.constant 0 : i32
    return %c0_i32, %c0_i32_0 : i32, i32
  }
  func.func @transform_6(%arg0: i32) -> (i32, i32) {
    %c0_i32 = arith.constant 0 : i32
    %c0_i32_0 = arith.constant 0 : i32
    %c0_i32_1 = arith.constant 0 : i32
    return %c0_i32, %c0_i32_0 : i32, i32
  }
  func.func @transform_7(%arg0: i32) -> (i32, i32) {
    %c0_i32 = arith.constant 0 : i32
    %c0_i32_0 = arith.constant 0 : i32
    %c0_i32_1 = arith.constant 0 : i32
    return %c0_i32, %c0_i32_0 : i32, i32
  }
  func.func @transform_8(%arg0: i32) -> (i32, i32) {
    %c0_i32 = arith.constant 0 : i32
    %c0_i32_0 = arith.constant 0 : i32
    %c0_i32_1 = arith.constant 0 : i32
    return %c0_i32, %c0_i32_0 : i32, i32
  }
  func.func @transform_9(%arg0: i32) -> (i32, i32) {
    %c0_i32 = arith.constant 0 : i32
    %c0_i32_0 = arith.constant 0 : i32
    %c0_i32_1 = arith.constant 0 : i32
    return %c0_i32, %c0_i32_0 : i32, i32
  }
  func.func @transform_10(%arg0: i32) -> (i32, i32) {
    %c0_i32 = arith.constant 0 : i32
    %c0_i32_0 = arith.constant 0 : i32
    %c0_i32_1 = arith.constant 0 : i32
    return %c0_i32, %c0_i32_0 : i32, i32
  }
  func.func @transform_11(%arg0: i32) -> (i32, i32) {
    %c0_i32 = arith.constant 0 : i32
    %c0_i32_0 = arith.constant 0 : i32
    %c0_i32_1 = arith.constant 0 : i32
    return %c0_i32, %c0_i32_0 : i32, i32
  }
  func.func @transform_12(%arg0: i32) -> (i32, i32) {
    %c0_i32 = arith.constant 0 : i32
    %c0_i32_0 = arith.constant 0 : i32
    %c0_i32_1 = arith.constant 0 : i32
    return %c0_i32, %c0_i32_0 : i32, i32
  }
  func.func @transform_13(%arg0: i32) -> (i32, i32) {
    %c0_i32 = arith.constant 0 : i32
    %c0_i32_0 = arith.constant 0 : i32
    %c0_i32_1 = arith.constant 0 : i32
    return %c0_i32, %c0_i32_0 : i32, i32
  }
  func.func @transform_14(%arg0: i32) -> (i32, i32) {
    %c0_i32 = arith.constant 0 : i32
    %c0_i32_0 = arith.constant 0 : i32
    %c0_i32_1 = arith.constant 0 : i32
    return %c0_i32, %c0_i32_0 : i32, i32
  }
  func.func @transform_15(%arg0: i32) -> (i32, i32) {
    %c0_i32 = arith.constant 0 : i32
    %c0_i32_0 = arith.constant 0 : i32
    return %arg0, %c0_i32 : i32, i32
  }
}

</mosaic_0001>

<bundles_post_ra>
// kernel: mlp_forward.1
= control target key start
LH: loop header
LB: loop body
LE: loop exit
PB: predicated region body
PF: predicated region fallthrough
CT: control target
= control target key end

     0   :  { %s3127_s0 = inlined_call_operand.hbm [shape: f32[8,60], index: 0, kind: input, shape index: {}]   ;;  %s3128_s1 = inlined_call_operand.hbm [shape: bf16[60,256], index: 1, kind: input, shape index: {}]   ;;  %s3129_s2 = inlined_call_operand.hbm [shape: f32[1,256], index: 2, kind: input, shape index: {}]   ;;  %s3130_s3 = inlined_call_operand.hbm [shape: bf16[256,256], index: 3, kind: input, shape index: {}]   ;;  %s3131_s4 = inlined_call_operand.hbm [shape: f32[1,256], index: 4, kind: input, shape index: {}]   ;;  %s3132_s5 = inlined_call_operand.hbm [shape: bf16[256,256], index: 5, kind: input, shape index: {}]   ;;  %s3133_s6 = inlined_call_operand.hbm [shape: f32[1,256], index: 6, kind: input, shape index: {}]   ;;  %s3134_s7 = inlined_call_operand.hbm [shape: bf16[256,256], index: 7, kind: input, shape index: {}]   ;;  %s3135_s8 = inlined_call_operand.hbm [shape: f32[1,256], index: 8, kind: input, shape index: {}]   ;;  %s3136_s9 = inlined_call_operand.hbm [shape: bf16[256,256], index: 9, kind: input, shape index: {}]   ;;  %s3137_s10 = inlined_call_operand.hbm [shape: f32[1,256], index: 10, kind: input, shape index: {}]   ;;  %s3138_s11 = inlined_call_operand.hbm [shape: bf16[256,256], index: 11, kind: input, shape index: {}]   ;;  %s3139_s12 = inlined_call_operand.hbm [shape: f32[1,256], index: 12, kind: input, shape index: {}]   ;;  %s3140_s13 = inlined_call_operand.hbm [shape: bf16[256,48], index: 13, kind: input, shape index: {}]   ;;  %s3141_s14 = inlined_call_operand.hbm [shape: f32[1,48], index: 14, kind: input, shape index: {}]   ;;  %s3142_s15 = inlined_call_operand.hbm [shape: f32[8,48], index: 15, kind: output, shape index: {}]  }
   0x1   :  { %3144 = sst [smem:[#allocation36_spill]] %s3142_s15 }
   0x2   :  { %20 = vsyncpa [#allocation3], 0 }
   0x3   :  { %21 = vsyncpa [#allocation6], 0 }
   0x4   :  { %22 = vsyncpa [#allocation9], 0 }
   0x5   :  { %23 = vsyncpa [#allocation12], 0 }
   0x6   :  { %24 = vsyncpa [#allocation15], 0 }
   0x7   :  { %25 = vsyncpa [#allocation18], 0 }
   0x8   :  { %26 = vsyncpa [#allocation21], 0 }
   0x9   :  { %27 = vsyncpa [#allocation24], 0 }
   0xa   :  { %28 = vsyncpa [#allocation4], 0  ;;  %s2775_s18 = smov [#allocation5]   ;;  %s2405_s22 = scalar_lea.hbm %s3128_s1, 1024 }
   0xb   :  { %s44_s19 = sshll.u32 %s2775_s18, 4  ;;  %p2406_p0 = scmp.ne.s32.totalorder %s3128_s1, %s2405_s22  ;;  %s45_s19 = int_to_ptr.vmem [resolvable:$true] %s44_s19 }
   0xc   :  { %p2409_p1 = scmp.lt.u32.totalorder %s2405_s22, %s3128_s1 }
   0xe   :  { %p2411_p2 = pnand %p2409_p1, %p2406_p0 }
  0x10   :  { %2414 = shalt.err (!%p2411_p2)
}
  0x11   :  { %s2415_s27 = scalar_lea.vmem %s45_s19, 1024  ;;  %p2420_p4 = scmp.lt.s32.totalorder %s45_s19, %s45_s19 }
  0x12   :  { %p2416_p3 = scmp.ne.s32.totalorder %s45_s19, %s2415_s27  ;;  %p2421_p5 = scmp.lt.s32.totalorder %s2415_s27, %s2415_s27 }
  0x14   :  { %p2422_p6 = por %p2421_p5, %p2420_p4 }
  0x16   :  { %p2423_p7 = pnand %p2422_p6, %p2416_p3 }
  0x18   :  { %2426 = shalt.err (!%p2423_p7)
}
  0x19   :  { %s2776_s28 = smov 128   ;;  %s2777_s29 = smov 8  }
  0x1a   :  { %50 = dma.hbm_to_vmem [thread:$0]  %s3128_s1, 1024, %s45_s19, [#allocation6], %s2776_s28, %s2776_s28, %s2777_s29  }
  0x1b   :  { %s2778_s17 = smov [#allocation8]   ;;  %s2779_s20 = smov [#allocation11]  }
  0x1c   :  { %s66_s18 = sshll.u32 %s2778_s17, 4  ;;  %s88_s21 = sshll.u32 %s2779_s20, 4  ;;  %s67_s18 = int_to_ptr.vmem [resolvable:$true] %s66_s18  ;;  %s89_s21 = int_to_ptr.vmem [resolvable:$true] %s88_s21 }
  0x1d   :  { %s2427_s24 = scalar_lea.hbm %s3130_s3, 4096 }
  0x1e   :  { %p2428_p8 = scmp.ne.s32.totalorder %s3130_s3, %s2427_s24  ;;  %p2431_p9 = scmp.lt.u32.totalorder %s2427_s24, %s3130_s3 }
  0x20   :  { %p2433_p10 = pnand %p2431_p9, %p2428_p8 }
  0x22   :  { %2436 = shalt.err (!%p2433_p10)
}
  0x23   :  { %s2437_s1 = scalar_lea.vmem %s67_s18, 4096  ;;  %p2442_p12 = scmp.lt.s32.totalorder %s67_s18, %s67_s18 }
  0x24   :  { %p2438_p11 = scmp.ne.s32.totalorder %s67_s18, %s2437_s1  ;;  %p2443_p13 = scmp.lt.s32.totalorder %s2437_s1, %s2437_s1 }
  0x26   :  { %p2444_p0 = por %p2443_p13, %p2442_p12 }
  0x28   :  { %p2445_p1 = pnand %p2444_p0, %p2438_p11 }
  0x2a   :  { %2448 = shalt.err (!%p2445_p1)
}
  0x2b   :  { %72 = dma.hbm_to_vmem [thread:$0]  %s3130_s3, 4096, %s67_s18, [#allocation9], %s2776_s28, %s2776_s28, %s2777_s29  }
  0x2c   :  { %s2449_s17 = scalar_lea.hbm %s3132_s5, 4096 }
  0x2d   :  { %p2450_p2 = scmp.ne.s32.totalorder %s3132_s5, %s2449_s17  ;;  %p2453_p3 = scmp.lt.u32.totalorder %s2449_s17, %s3132_s5 }
  0x2f   :  { %p2455_p4 = pnand %p2453_p3, %p2450_p2 }
  0x31   :  { %2458 = shalt.err (!%p2455_p4)
}
  0x32   :  { %s2459_s25 = scalar_lea.vmem %s89_s21, 4096  ;;  %p2464_p6 = scmp.lt.s32.totalorder %s89_s21, %s89_s21 }
  0x33   :  { %p2460_p5 = scmp.ne.s32.totalorder %s89_s21, %s2459_s25  ;;  %p2465_p7 = scmp.lt.s32.totalorder %s2459_s25, %s2459_s25 }
  0x35   :  { %p2466_p8 = por %p2465_p7, %p2464_p6 }
  0x37   :  { %p2467_p9 = pnand %p2466_p8, %p2460_p5 }
  0x39   :  { %2470 = shalt.err (!%p2467_p9)
}
  0x3a   :  { %94 = dma.hbm_to_vmem [thread:$0]  %s3132_s5, 4096, %s89_s21, [#allocation12], %s2776_s28, %s2776_s28, %s2777_s29  }
  0x3b   :  { %s2780_s26 = smov [#allocation14]   ;;  %s2781_s1 = smov [#allocation17]  }
  0x3c   :  { %s110_s27 = sshll.u32 %s2780_s26, 4  ;;  %s132_s19 = sshll.u32 %s2781_s1, 4  ;;  %s111_s27 = int_to_ptr.vmem [resolvable:$true] %s110_s27  ;;  %s133_s19 = int_to_ptr.vmem [resolvable:$true] %s132_s19 }
  0x3d   :  { %s2471_s15 = scalar_lea.hbm %s3134_s7, 4096 }
  0x3e   :  { %p2472_p10 = scmp.ne.s32.totalorder %s3134_s7, %s2471_s15  ;;  %p2475_p11 = scmp.lt.u32.totalorder %s2471_s15, %s3134_s7 }
  0x40   :  { %p2477_p12 = pnand %p2475_p11, %p2472_p10 }
  0x42   :  { %2480 = shalt.err (!%p2477_p12)
}
  0x43   :  { %s2481_s5 = scalar_lea.vmem %s111_s27, 4096  ;;  %p2486_p0 = scmp.lt.s32.totalorder %s111_s27, %s111_s27 }
  0x44   :  { %p2482_p13 = scmp.ne.s32.totalorder %s111_s27, %s2481_s5  ;;  %p2487_p1 = scmp.lt.s32.totalorder %s2481_s5, %s2481_s5 }
  0x46   :  { %p2488_p2 = por %p2487_p1, %p2486_p0 }
  0x48   :  { %p2489_p3 = pnand %p2488_p2, %p2482_p13 }
  0x4a   :  { %2492 = shalt.err (!%p2489_p3)
}
  0x4b   :  { %116 = dma.hbm_to_vmem [thread:$0]  %s3134_s7, 4096, %s111_s27, [#allocation15], %s2776_s28, %s2776_s28, %s2777_s29  }
  0x4c   :  { %s2493_s18 = scalar_lea.hbm %s3136_s9, 4096 }
  0x4d   :  { %p2494_p4 = scmp.ne.s32.totalorder %s3136_s9, %s2493_s18  ;;  %p2497_p5 = scmp.lt.u32.totalorder %s2493_s18, %s3136_s9 }
  0x4f   :  { %p2499_p6 = pnand %p2497_p5, %p2494_p4 }
  0x51   :  { %2502 = shalt.err (!%p2499_p6)
}
  0x52   :  { %s2503_s15 = scalar_lea.vmem %s133_s19, 4096  ;;  %p2508_p8 = scmp.lt.s32.totalorder %s133_s19, %s133_s19 }
  0x53   :  { %p2504_p7 = scmp.ne.s32.totalorder %s133_s19, %s2503_s15  ;;  %p2509_p9 = scmp.lt.s32.totalorder %s2503_s15, %s2503_s15 }
  0x55   :  { %p2510_p10 = por %p2509_p9, %p2508_p8 }
  0x57   :  { %p2511_p11 = pnand %p2510_p10, %p2504_p7 }
  0x59   :  { %2514 = shalt.err (!%p2511_p11)
}
  0x5a   :  { %138 = dma.hbm_to_vmem [thread:$0]  %s3136_s9, 4096, %s133_s19, [#allocation18], %s2776_s28, %s2776_s28, %s2777_s29  }
  0x5b   :  { %s2782_s17 = smov [#allocation20]   ;;  %s2783_s22 = smov [#allocation23]  }
  0x5c   :  { %s154_s20 = sshll.u32 %s2782_s17, 4  ;;  %s176_s23 = sshll.u32 %s2783_s22, 4  ;;  %s155_s20 = int_to_ptr.vmem [resolvable:$true] %s154_s20  ;;  %s177_s23 = int_to_ptr.vmem [resolvable:$true] %s176_s23 }
  0x5d   :  { %s2515_s24 = scalar_lea.hbm %s3138_s11, 4096 }
  0x5e   :  { %p2516_p12 = scmp.ne.s32.totalorder %s3138_s11, %s2515_s24  ;;  %p2519_p13 = scmp.lt.u32.totalorder %s2515_s24, %s3138_s11 }
  0x60   :  { %p2521_p0 = pnand %p2519_p13, %p2516_p12 }
  0x62   :  { %2524 = shalt.err (!%p2521_p0)
}
  0x63   :  { %s2525_s9 = scalar_lea.vmem %s155_s20, 4096  ;;  %p2530_p2 = scmp.lt.s32.totalorder %s155_s20, %s155_s20 }
  0x64   :  { %p2526_p1 = scmp.ne.s32.totalorder %s155_s20, %s2525_s9  ;;  %p2531_p3 = scmp.lt.s32.totalorder %s2525_s9, %s2525_s9 }
  0x66   :  { %p2532_p4 = por %p2531_p3, %p2530_p2 }
  0x68   :  { %p2533_p5 = pnand %p2532_p4, %p2526_p1 }
  0x6a   :  { %2536 = shalt.err (!%p2533_p5)
}
  0x6b   :  { %160 = dma.hbm_to_vmem [thread:$0]  %s3138_s11, 4096, %s155_s20, [#allocation21], %s2776_s28, %s2776_s28, %s2777_s29  }
  0x6c   :  { %s2537_s15 = scalar_lea.hbm %s3140_s13, 2048 }
  0x6d   :  { %p2538_p6 = scmp.ne.s32.totalorder %s3140_s13, %s2537_s15  ;;  %p2541_p7 = scmp.lt.u32.totalorder %s2537_s15, %s3140_s13 }
  0x6f   :  { %p2543_p8 = pnand %p2541_p7, %p2538_p6 }
  0x71   :  { %2546 = shalt.err (!%p2543_p8)
}
  0x72   :  { %s2547_s5 = scalar_lea.vmem %s177_s23, 2048  ;;  %p2552_p10 = scmp.lt.s32.totalorder %s177_s23, %s177_s23 }
  0x73   :  { %p2548_p9 = scmp.ne.s32.totalorder %s177_s23, %s2547_s5  ;;  %p2553_p11 = scmp.lt.s32.totalorder %s2547_s5, %s2547_s5 }
  0x75   :  { %p2554_p12 = por %p2553_p11, %p2552_p10 }
  0x77   :  { %p2555_p13 = pnand %p2554_p12, %p2548_p9 }
  0x79   :  { %2558 = shalt.err (!%p2555_p13)
}
  0x7a   :  { %s2784_s11 = smov 64   ;;  %s2785_s28 = smov 4  }
  0x7b   :  { %182 = dma.hbm_to_vmem [thread:$0]  %s3140_s13, 2048, %s177_s23, [#allocation24], %s2784_s11, %s2784_s11, %s2785_s28  }
  0x7c   :  { %s2786_s21 = smov [#allocation2]   ;;  %s2787_s25 = smov [#allocation7]  }
  0x7d   :  { %s35_s24 = sshll.u32 %s2786_s21, 4  ;;  %s57_s3 = sshll.u32 %s2787_s25, 4  ;;  %s36_s24 = int_to_ptr.vmem [resolvable:$true] %s35_s24  ;;  %s58_s3 = int_to_ptr.vmem [resolvable:$true] %s57_s3 }
  0x7e   :  { %s2559_s9 = scalar_lea.hbm %s3127_s0, 128 }
  0x7f   :  { %p2560_p0 = scmp.ne.s32.totalorder %s3127_s0, %s2559_s9  ;;  %p2563_p1 = scmp.lt.u32.totalorder %s2559_s9, %s3127_s0 }
  0x81   :  { %p2565_p2 = pnand %p2563_p1, %p2560_p0 }
  0x83   :  { %2568 = shalt.err (!%p2565_p2)
}
  0x84   :  { %s2569_s13 = scalar_lea.vmem %s36_s24, 128  ;;  %p2574_p4 = scmp.lt.s32.totalorder %s36_s24, %s36_s24 }
  0x85   :  { %p2570_p3 = scmp.ne.s32.totalorder %s36_s24, %s2569_s13  ;;  %p2575_p5 = scmp.lt.s32.totalorder %s2569_s13, %s2569_s13 }
  0x87   :  { %p2576_p6 = por %p2575_p5, %p2574_p4 }
  0x89   :  { %p2577_p7 = pnand %p2576_p6, %p2570_p3 }
  0x8b   :  { %2580 = shalt.err (!%p2577_p7)
}
  0x8c   :  { %38 = dma.hbm_to_vmem [thread:$0]  %s3127_s0, 128, %s36_s24, [#allocation3]  }
  0x8d   :  { %s2581_s17 = scalar_lea.hbm %s3129_s2, 32 }
  0x8e   :  { %p2582_p8 = scmp.ne.s32.totalorder %s3129_s2, %s2581_s17  ;;  %p2585_p9 = scmp.lt.u32.totalorder %s2581_s17, %s3129_s2 }
  0x90   :  { %p2587_p10 = pnand %p2585_p9, %p2582_p8 }
  0x92   :  { %2590 = shalt.err (!%p2587_p10)
}
  0x93   :  { %s2591_s29 = scalar_lea.vmem %s58_s3, 32  ;;  %p2596_p12 = scmp.lt.s32.totalorder %s58_s3, %s58_s3 }
  0x94   :  { %p2592_p11 = scmp.ne.s32.totalorder %s58_s3, %s2591_s29  ;;  %p2597_p13 = scmp.lt.s32.totalorder %s2591_s29, %s2591_s29 }
  0x96   :  { %p2598_p0 = por %p2597_p13, %p2596_p12 }
  0x98   :  { %p2599_p1 = pnand %p2598_p0, %p2592_p11 }
  0x9a   :  { %2602 = shalt.err (!%p2599_p1)
}
  0x9b   :  { %60 = dma.hbm_to_vmem [thread:$0]  %s3129_s2, 32, %s58_s3, [#allocation6]  }
  0x9c   :  { %s2788_s21 = smov [#allocation10]   ;;  %s2789_s25 = smov [#allocation13]  }
  0x9d   :  { %s79_s24 = sshll.u32 %s2788_s21, 4  ;;  %s101_s18 = sshll.u32 %s2789_s25, 4  ;;  %s80_s24 = int_to_ptr.vmem [resolvable:$true] %s79_s24  ;;  %s102_s18 = int_to_ptr.vmem [resolvable:$true] %s101_s18 }
  0x9e   :  { %s2603_s19 = scalar_lea.hbm %s3131_s4, 32 }
  0x9f   :  { %p2604_p2 = scmp.ne.s32.totalorder %s3131_s4, %s2603_s19  ;;  %p2607_p3 = scmp.lt.u32.totalorder %s2603_s19, %s3131_s4 }
  0xa1   :  { %p2609_p4 = pnand %p2607_p3, %p2604_p2 }
  0xa3   :  { %2612 = shalt.err (!%p2609_p4)
}
  0xa4   :  { %s2613_s2 = scalar_lea.vmem %s80_s24, 32  ;;  %p2618_p6 = scmp.lt.s32.totalorder %s80_s24, %s80_s24 }
  0xa5   :  { %p2614_p5 = scmp.ne.s32.totalorder %s80_s24, %s2613_s2  ;;  %p2619_p7 = scmp.lt.s32.totalorder %s2613_s2, %s2613_s2 }
  0xa7   :  { %p2620_p8 = por %p2619_p7, %p2618_p6 }
  0xa9   :  { %p2621_p9 = pnand %p2620_p8, %p2614_p5 }
  0xab   :  { %2624 = shalt.err (!%p2621_p9)
}
  0xac   :  { %82 = dma.hbm_to_vmem [thread:$0]  %s3131_s4, 32, %s80_s24, [#allocation9]  }
  0xad   :  { %s2625_s27 = scalar_lea.hbm %s3133_s6, 32 }
  0xae   :  { %p2626_p10 = scmp.ne.s32.totalorder %s3133_s6, %s2625_s27  ;;  %p2629_p11 = scmp.lt.u32.totalorder %s2625_s27, %s3133_s6 }
  0xb0   :  { %p2631_p12 = pnand %p2629_p11, %p2626_p10 }
  0xb2   :  { %2634 = shalt.err (!%p2631_p12)
}
  0xb3   :  { %s2635_s28 = scalar_lea.vmem %s102_s18, 32  ;;  %p2640_p0 = scmp.lt.s32.totalorder %s102_s18, %s102_s18 }
  0xb4   :  { %p2636_p13 = scmp.ne.s32.totalorder %s102_s18, %s2635_s28  ;;  %p2641_p1 = scmp.lt.s32.totalorder %s2635_s28, %s2635_s28 }
  0xb6   :  { %p2642_p2 = por %p2641_p1, %p2640_p0 }
  0xb8   :  { %p2643_p3 = pnand %p2642_p2, %p2636_p13 }
  0xba   :  { %2646 = shalt.err (!%p2643_p3)
}
  0xbb   :  { %104 = dma.hbm_to_vmem [thread:$0]  %s3133_s6, 32, %s102_s18, [#allocation12]  }
  0xbc   :  { %s2790_s0 = smov [#allocation16]   ;;  %s2791_s21 = smov [#allocation19]  }
  0xbd   :  { %s123_s20 = sshll.u32 %s2790_s0, 4  ;;  %s145_s24 = sshll.u32 %s2791_s21, 4  ;;  %s124_s20 = int_to_ptr.vmem [resolvable:$true] %s123_s20  ;;  %s146_s24 = int_to_ptr.vmem [resolvable:$true] %s145_s24 }
  0xbe   :  { %s2647_s9 = scalar_lea.hbm %s3135_s8, 32 }
  0xbf   :  { %p2648_p4 = scmp.ne.s32.totalorder %s3135_s8, %s2647_s9  ;;  %p2651_p5 = scmp.lt.u32.totalorder %s2647_s9, %s3135_s8 }
  0xc1   :  { %p2653_p6 = pnand %p2651_p5, %p2648_p4 }
  0xc3   :  { %2656 = shalt.err (!%p2653_p6)
}
  0xc4   :  { %s2657_s6 = scalar_lea.vmem %s124_s20, 32  ;;  %p2662_p8 = scmp.lt.s32.totalorder %s124_s20, %s124_s20 }
  0xc5   :  { %p2658_p7 = scmp.ne.s32.totalorder %s124_s20, %s2657_s6  ;;  %p2663_p9 = scmp.lt.s32.totalorder %s2657_s6, %s2657_s6 }
  0xc7   :  { %p2664_p10 = por %p2663_p9, %p2662_p8 }
  0xc9   :  { %p2665_p11 = pnand %p2664_p10, %p2658_p7 }
  0xcb   :  { %2668 = shalt.err (!%p2665_p11)
}
  0xcc   :  { %126 = dma.hbm_to_vmem [thread:$0]  %s3135_s8, 32, %s124_s20, [#allocation15]  }
  0xcd   :  { %s2669_s23 = scalar_lea.hbm %s3137_s10, 32 }
  0xce   :  { %p2670_p12 = scmp.ne.s32.totalorder %s3137_s10, %s2669_s23  ;;  %p2673_p13 = scmp.lt.u32.totalorder %s2669_s23, %s3137_s10 }
  0xd0   :  { %p2675_p0 = pnand %p2673_p13, %p2670_p12 }
  0xd2   :  { %2678 = shalt.err (!%p2675_p0)
}
  0xd3   :  { %s2679_s22 = scalar_lea.vmem %s146_s24, 32  ;;  %p2684_p2 = scmp.lt.s32.totalorder %s146_s24, %s146_s24 }
  0xd4   :  { %p2680_p1 = scmp.ne.s32.totalorder %s146_s24, %s2679_s22  ;;  %p2685_p3 = scmp.lt.s32.totalorder %s2679_s22, %s2679_s22 }
  0xd6   :  { %p2686_p4 = por %p2685_p3, %p2684_p2 }
  0xd8   :  { %p2687_p5 = pnand %p2686_p4, %p2680_p1 }
  0xda   :  { %2690 = shalt.err (!%p2687_p5)
}
  0xdb   :  { %148 = dma.hbm_to_vmem [thread:$0]  %s3137_s10, 32, %s146_s24, [#allocation18]  }
  0xdc   :  { %s2792_s11 = smov [#allocation22]   ;;  %s2793_s4 = smov [#allocation25]  }
  0xdd   :  { %s167_s28 = sshll.u32 %s2792_s11, 4  ;;  %s189_s29 = sshll.u32 %s2793_s4, 4  ;;  %s168_s28 = int_to_ptr.vmem [resolvable:$true] %s167_s28  ;;  %s190_s29 = int_to_ptr.vmem [resolvable:$true] %s189_s29 }
  0xde   :  { %s2691_s21 = scalar_lea.hbm %s3139_s12, 32 }
  0xdf   :  { %p2692_p6 = scmp.ne.s32.totalorder %s3139_s12, %s2691_s21  ;;  %p2695_p7 = scmp.lt.u32.totalorder %s2691_s21, %s3139_s12 }
  0xe1   :  { %p2697_p8 = pnand %p2695_p7, %p2692_p6 }
  0xe3   :  { %2700 = shalt.err (!%p2697_p8)
}
  0xe4   :  { %s2701_s10 = scalar_lea.vmem %s168_s28, 32  ;;  %p2706_p10 = scmp.lt.s32.totalorder %s168_s28, %s168_s28 }
  0xe5   :  { %p2702_p9 = scmp.ne.s32.totalorder %s168_s28, %s2701_s10  ;;  %p2707_p11 = scmp.lt.s32.totalorder %s2701_s10, %s2701_s10 }
  0xe7   :  { %p2708_p12 = por %p2707_p11, %p2706_p10 }
  0xe9   :  { %p2709_p13 = pnand %p2708_p12, %p2702_p9 }
  0xeb   :  { %2712 = shalt.err (!%p2709_p13)
}
  0xec   :  { %170 = dma.hbm_to_vmem [thread:$0]  %s3139_s12, 32, %s168_s28, [#allocation21]  }
  0xed   :  { %s2713_s6 = scalar_lea.hbm %s3141_s14, 16 }
  0xee   :  { %p2714_p0 = scmp.ne.s32.totalorder %s3141_s14, %s2713_s6  ;;  %p2717_p1 = scmp.lt.u32.totalorder %s2713_s6, %s3141_s14 }
  0xf0   :  { %p2719_p2 = pnand %p2717_p1, %p2714_p0 }
  0xf2   :  { %2722 = shalt.err (!%p2719_p2)
}
  0xf3   :  { %s2723_s23 = scalar_lea.vmem %s190_s29, 16  ;;  %s2727_s15 = scalar_lea.vmem %s190_s29, 32 }
  0xf4   :  { %p2724_p3 = scmp.ne.s32.totalorder %s190_s29, %s2723_s23  ;;  %p2728_p4 = scmp.lt.s32.totalorder %s190_s29, %s190_s29 }
  0xf5   :  { %p2729_p5 = scmp.lt.s32.totalorder %s2727_s15, %s2723_s23 }
  0xf7   :  { %p2730_p6 = por %p2729_p5, %p2728_p4 }
  0xf9   :  { %p2731_p7 = pnand %p2730_p6, %p2724_p3 }
  0xfb   :  { %2734 = shalt.err (!%p2731_p7)
}
  0xfc   :  { %192 = dma.hbm_to_vmem [thread:$0]  %s3141_s14, 16, %s190_s29, [#allocation24]  }
  0xfd   :  { %2757 = dma.done.wait [#allocation3], 128  }
  0xfe   :  { %2758 = vsyncadd [#allocation3], 4294967168 }
  0xff   :  { %2759 = dma.done.wait [#allocation6], 1056  }
 0x100   :  { %2760 = vsyncadd [#allocation6], 4294966240 }
 0x101   :  { %2761 = dma.done.wait [#allocation9], 4128  }
 0x102   :  { %2762 = vsyncadd [#allocation9], 4294963168 }
 0x103   :  { %2763 = dma.done.wait [#allocation12], 4128  }
 0x104   :  { %2764 = vsyncadd [#allocation12], 4294963168 }
 0x105   :  { %2765 = dma.done.wait [#allocation15], 4128  }
 0x106   :  { %2766 = vsyncadd [#allocation15], 4294963168 }
 0x107   :  { %2767 = dma.done.wait [#allocation18], 4128  }
 0x108   :  { %2768 = vsyncadd [#allocation18], 4294963168 }
 0x109   :  { %2769 = dma.done.wait [#allocation21], 4128  }
 0x10a   :  { %2770 = vsyncadd [#allocation21], 4294963168 }
 0x10b   :  { %2771 = dma.done.wait [#allocation24], 2064  }
 0x10c   :  { %2772 = vsyncadd [#allocation24], 4294965232  ;;  %v2794_v0 = vmov 0   ;;  %v2137_v1 = vld [vmem:[#allocation5 + $0x4] ss:$8 sps:$4 sm:$0xff]   ;;  %vm292_vm0 = vcmask 1045504  }
 0x10d   :  { %331 = vmatprep.mubr.bf16.mxu0 %v2794_v0  ;;  %v2139_v2 = vld [vmem:[#allocation5] ss:$8 sps:$4 sm:$0xff]   ;;  %299 = vmatprep.subr.bf16.mxu0 %v2137_v1  ;;  %v2140_v3 = vld [vmem:[#allocation5 + $0x14] ss:$8 sps:$4 sm:$0xff]   ;;  %v2142_v4 = vld [vmem:[#allocation5 + $0x10] ss:$8 sps:$4 sm:$0xff]  }
 0x10e   :  { %300 = vmatpush1.bf16.msra.mxu0 %v2139_v2  ;;  %v2143_v5 = vld [vmem:[#allocation5 + $0x24] ss:$8 sps:$4 sm:$0xff]   ;;  %v2145_v6 = vld [vmem:[#allocation5 + $0x20] ss:$8 sps:$4 sm:$0xff]   ;;  %v2154_v12 = vld [vmem:[#allocation8 + $0x10] ss:$8 sps:$4 sm:$0xff]  }
 0x10f   :  { %301 = vmatprep.subr.bf16.mxu0 %v2140_v3  ;;  %v2146_v7 = vld [vmem:[#allocation5 + $0x34] ss:$8 sps:$4 sm:$0x3f]   ;;  %v2149_v8 = vld [vmem:[#allocation8 + $0x4] ss:$8 sps:$4 sm:$0xff]   ;;  %vm288_vm1 = vcmask 490496  }
 0x110   :  { %v2151_v9 = vld [vmem:[#allocation8] ss:$8 sps:$4 sm:$0xff]   ;;  %v2152_v10 = vld [vmem:[#allocation8 + $0x14] ss:$8 sps:$4 sm:$0xff]   ;;  %566 = vmatprep.subr.bf16.mxu1 %v2149_v8  ;;  %v2155_v13 = vld [vmem:[#allocation8 + $0x24] ss:$8 sps:$4 sm:$0xff]  }
 0x111   :  { %v2148_v11 = vld [vmem:[#allocation5 + $0x30] ss:$8 sps:$4 sm:$0x3f]   ;;  %567 = vmatpush1.bf16.msra.mxu1 %v2151_v9  ;;  %v2157_v16 = vld [vmem:[#allocation8 + $0x20] ss:$8 sps:$4 sm:$0xff]   ;;  %v343_v9 = vlaneseq  ;;  %s2795_s14 = smov [#allocation26]  }
 0x112   :  { %302 = vmatpush1.bf16.msra.mxu0 %v2142_v4  ;;  %568 = vmatprep.subr.bf16.mxu1 %v2152_v10  ;;  %v239_v14 = vld [vmem:[#allocation2] sm:$0xff]  ;;  %v294_v15 = vsel %vm292_vm0, %v2148_v11, 0  ;;  %v2161_v20 = vld [vmem:[#allocation8 + $0x44] ss:$8 sps:$4 sm:$0xff]   ;;  %v2163_v21 = vld [vmem:[#allocation8 + $0x40] ss:$8 sps:$4 sm:$0xff]  }
 0x113   :  { %303 = vmatprep.subr.bf16.mxu0 %v2143_v5  ;;  %v240_v17 = vpack.c.bf16 %v239_v14, %v239_v14  ;;  %v2158_v18 = vld [vmem:[#allocation8 + $0x34] ss:$8 sps:$4 sm:$0xff]   ;;  %v2160_v19 = vld [vmem:[#allocation8 + $0x30] ss:$8 sps:$4 sm:$0xff]   ;;  %v2167_v24 = vld [vmem:[#allocation8 + $0x64] ss:$8 sps:$4 sm:$0xff]  }
 0x114   :  { %v2164_v22 = vld [vmem:[#allocation8 + $0x54] ss:$8 sps:$4 sm:$0xff]   ;;  %v2166_v23 = vld [vmem:[#allocation8 + $0x50] ss:$8 sps:$4 sm:$0xff]   ;;  %v2169_v25 = vld [vmem:[#allocation8 + $0x60] ss:$8 sps:$4 sm:$0xff]  }
 0x115   :  { %569 = vmatpush1.bf16.msra.mxu1 %v2154_v12  ;;  %v2170_v26 = vld [vmem:[#allocation8 + $0x74] ss:$8 sps:$4 sm:$0xff]   ;;  %v2172_v27 = vld [vmem:[#allocation8 + $0x70] ss:$8 sps:$4 sm:$0xff]   ;;  %v2173_v28 = vld [vmem:[#allocation8 + $0x84] ss:$8 sps:$4 sm:$0xff]  }
 0x116   :  { %304 = vmatpush1.bf16.msra.mxu0 %v2145_v6  ;;  %570 = vmatprep.subr.bf16.mxu1 %v2155_v13  ;;  %v2175_v29 = vld [vmem:[#allocation8 + $0x80] ss:$8 sps:$4 sm:$0xff]   ;;  %v2176_v30 = vld [vmem:[#allocation8 + $0x94] ss:$8 sps:$4 sm:$0xff]   ;;  %v2178_v31 = vld [vmem:[#allocation8 + $0x90] ss:$8 sps:$4 sm:$0xff]  }
 0x117   :  { %1915 = vmatprep.subr.msk.bf16.mxu0 %vm292_vm0, %v2146_v7  ;;  %v2179_v32 = vld [vmem:[#allocation8 + $0xa4] ss:$8 sps:$4 sm:$0xff]   ;;  %v2181_v33 = vld [vmem:[#allocation8 + $0xa0] ss:$8 sps:$4 sm:$0xff]   ;;  %v2182_v34 = vld [vmem:[#allocation8 + $0xb4] ss:$8 sps:$4 sm:$0xff]  }
 0x118   :  { %v2184_v35 = vld [vmem:[#allocation8 + $0xb0] ss:$8 sps:$4 sm:$0xff]   ;;  %v2185_v36 = vld [vmem:[#allocation8 + $0xc4] ss:$8 sps:$4 sm:$0xff]   ;;  %v2187_v37 = vld [vmem:[#allocation8 + $0xc0] ss:$8 sps:$4 sm:$0xff]  }
 0x119   :  { %571 = vmatpush1.bf16.msra.mxu1 %v2157_v16  ;;  %v2188_v38 = vld [vmem:[#allocation8 + $0xd4] ss:$8 sps:$4 sm:$0xff]   ;;  %v2190_v39 = vld [vmem:[#allocation8 + $0xd0] ss:$8 sps:$4 sm:$0xff]   ;;  %v2191_v40 = vld [vmem:[#allocation8 + $0xe4] ss:$8 sps:$4 sm:$0xff]  }
 0x11a   :  { %306 = vmatpush1.bf16.msra.mxu0 %v294_v15  ;;  %572 = vmatprep.subr.bf16.mxu1 %v2158_v18  ;;  %v2193_v41 = vld [vmem:[#allocation8 + $0xe0] ss:$8 sps:$4 sm:$0xff]   ;;  %v2194_v42 = vld [vmem:[#allocation8 + $0xf4] ss:$8 sps:$4 sm:$0xff]   ;;  %v2196_v43 = vld [vmem:[#allocation8 + $0xf0] ss:$8 sps:$4 sm:$0xff]  }
 0x11b   :  { %v2197_v44 = vld [vmem:[#allocation11] ss:$8 sps:$4 sm:$0xff]   ;;  %v2199_v45 = vld [vmem:[#allocation11 + $0x4] ss:$8 sps:$4 sm:$0xff]   ;;  %v2202_v46 = vld [vmem:[#allocation11 + $0x14] ss:$8 sps:$4 sm:$0xff]  }
 0x11c   :  { %833 = vmatprep.subr.bf16.mxu0 %v2199_v45  ;;  %v2200_v47 = vld [vmem:[#allocation11 + $0x10] ss:$8 sps:$4 sm:$0xff]   ;;  %v2205_v48 = vld [vmem:[#allocation11 + $0x24] ss:$8 sps:$4 sm:$0xff]   ;;  %v2203_v49 = vld [vmem:[#allocation11 + $0x20] ss:$8 sps:$4 sm:$0xff]  }
 0x11d   :  { %1916 = vmatmul.mubr.msk.bf16.vlgmr.msra.gmra.mrb[0].mxu0 %vm288_vm1, %v240_v17  ;;  %573 = vmatpush1.bf16.msra.mxu1 %v2160_v19  ;;  %v2208_v50 = vld [vmem:[#allocation11 + $0x34] ss:$8 sps:$4 sm:$0xff]   ;;  %v2206_v51 = vld [vmem:[#allocation11 + $0x30] ss:$8 sps:$4 sm:$0xff]   ;;  %v2211_v52 = vld [vmem:[#allocation11 + $0x44] ss:$8 sps:$4 sm:$0xff]  }
 0x11e   :  { %574 = vmatprep.subr.bf16.mxu1 %v2161_v20  ;;  %834 = vmatpush1.bf16.msra.mxu0 %v2197_v44  ;;  %v2209_v53 = vld [vmem:[#allocation11 + $0x40] ss:$8 sps:$4 sm:$0xff]   ;;  %v2214_v54 = vld [vmem:[#allocation11 + $0x54] ss:$8 sps:$4 sm:$0xff]   ;;  %v2212_v55 = vld [vmem:[#allocation11 + $0x50] ss:$8 sps:$4 sm:$0xff]  }
 0x11f   :  { %835 = vmatprep.subr.bf16.mxu0 %v2202_v46  ;;  %v2217_v56 = vld [vmem:[#allocation11 + $0x64] ss:$8 sps:$4 sm:$0xff]   ;;  %v2215_v57 = vld [vmem:[#allocation11 + $0x60] ss:$8 sps:$4 sm:$0xff]   ;;  %v2220_v58 = vld [vmem:[#allocation11 + $0x74] ss:$8 sps:$4 sm:$0xff]  }
 0x120   :  { %v2218_v59 = vld [vmem:[#allocation11 + $0x70] ss:$8 sps:$4 sm:$0xff]   ;;  %v2223_v60 = vld [vmem:[#allocation11 + $0x84] ss:$8 sps:$4 sm:$0xff]   ;;  %v2221_v61 = vld [vmem:[#allocation11 + $0x80] ss:$8 sps:$4 sm:$0xff]  }
 0x121   :  { %575 = vmatpush1.bf16.msra.mxu1 %v2163_v21  ;;  %v2226_v62 = vld [vmem:[#allocation11 + $0x94] ss:$8 sps:$4 sm:$0xff]   ;;  %v2224_v63 = vld [vmem:[#allocation11 + $0x90] ss:$8 sps:$4 sm:$0xff]   ;;  %v2229_v1 = vld [vmem:[#allocation11 + $0xa4] ss:$8 sps:$4 sm:$0xff]  }
 0x122   :  { %576 = vmatprep.subr.bf16.mxu1 %v2164_v22  ;;  %836 = vmatpush1.bf16.msra.mxu0 %v2200_v47  ;;  %v2227_v2 = vld [vmem:[#allocation11 + $0xa0] ss:$8 sps:$4 sm:$0xff]   ;;  %v2232_v3 = vld [vmem:[#allocation11 + $0xb4] ss:$8 sps:$4 sm:$0xff]   ;;  %v2230_v4 = vld [vmem:[#allocation11 + $0xb0] ss:$8 sps:$4 sm:$0xff]  }
 0x123   :  { %837 = vmatprep.subr.bf16.mxu0 %v2205_v48  ;;  %v2235_v5 = vld [vmem:[#allocation11 + $0xc4] ss:$8 sps:$4 sm:$0xff]   ;;  %v2233_v6 = vld [vmem:[#allocation11 + $0xc0] ss:$8 sps:$4 sm:$0xff]   ;;  %v2238_v7 = vld [vmem:[#allocation11 + $0xd4] ss:$8 sps:$4 sm:$0xff]  }
 0x124   :  { %v2236_v8 = vld [vmem:[#allocation11 + $0xd0] ss:$8 sps:$4 sm:$0xff]   ;;  %v344_v10 = vshrl.u32 %v343_v9, 7  ;;  %v249_v12 = vld [vmem:[#allocation7] sm:$0x3]  ;;  %s1891_s27 = sshll.u32 %s2795_s14, 4  ;;  %s1892_s27 = int_to_ptr.vmem [resolvable:$true] %s1891_s27 }
 0x125   :  { %577 = vmatpush1.bf16.msra.mxu1 %v2166_v23  ;;  %v2259_v44 = vld [vmem:[#allocation14 + $0x44] ss:$8 sps:$4 sm:$0xff]   ;;  %v2257_v45 = vld [vmem:[#allocation14 + $0x40] ss:$8 sps:$4 sm:$0xff]   ;;  %v2262_v46 = vld [vmem:[#allocation14 + $0x54] ss:$8 sps:$4 sm:$0xff]   ;;  %p2740_p9 = scmp.lt.s32.totalorder %s1892_s27, %s1892_s27 }
 0x126   :  { %578 = vmatprep.subr.bf16.mxu1 %v2167_v24  ;;  %838 = vmatpush1.bf16.msra.mxu0 %v2203_v49  ;;  %v3075_v11 = vsub.s32 0, %v344_v10  ;;  %v3077_v13 = vsub.s32 1, %v344_v10  ;;  %v2260_v47 = vld [vmem:[#allocation14 + $0x50] ss:$8 sps:$4 sm:$0xff]   ;;  %v2265_v48 = vld [vmem:[#allocation14 + $0x64] ss:$8 sps:$4 sm:$0xff]  }
 0x127   :  { %839 = vmatprep.subr.bf16.mxu0 %v2208_v50  ;;  %v2263_v49 = vld [vmem:[#allocation14 + $0x60] ss:$8 sps:$4 sm:$0xff]   ;;  %v2268_v50 = vld [vmem:[#allocation14 + $0x74] ss:$8 sps:$4 sm:$0xff]   ;;  %vm1883_vm2 = vcmask 392192   ;;  %s2735_s17 = scalar_lea.vmem %s1892_s27, 128 }
 0x128   :  { %v346_v14 = vrot.slane %v249_v12, %v3075_v11  ;;  %v350_v15 = vrot.slane %v249_v12, %v3077_v13  ;;  %p2736_p8 = scmp.ne.s32.totalorder %s1892_s27, %s2735_s17  ;;  %p2741_p10 = scmp.lt.s32.totalorder %s2735_s17, %s2735_s17 }
 0x129   :  { %579 = vmatpush1.bf16.msra.mxu1 %v2169_v25 }
 0x12a   :  { %580 = vmatprep.subr.bf16.mxu1 %v2170_v26  ;;  %840 = vmatpush1.bf16.msra.mxu0 %v2206_v51  ;;  %v353_v16 = vpack.c.bf16 %v346_v14, %v346_v14  ;;  %v354_v17 = vpack.c.bf16 %v350_v15, %v350_v15  ;;  %v2266_v51 = vld [vmem:[#allocation14 + $0x70] ss:$8 sps:$4 sm:$0xff]   ;;  %p2742_p11 = por %p2741_p10, %p2740_p9 }
 0x12b   :  { %841 = vmatprep.subr.bf16.mxu0 %v2211_v52  ;;  %v2271_v52 = vld [vmem:[#allocation14 + $0x84] ss:$8 sps:$4 sm:$0xff]  }
 0x12c   :  { %v356_v18 = vpack.i.b16 %v353_v16, %v353_v16  ;;  %v363_v19 = vpack.i.b16 %v354_v17, %v354_v17  ;;  %p2743_p12 = pnand %p2742_p11, %p2736_p8 }
 0x12d   :  { %581 = vmatpush1.bf16.msra.mxu1 %v2172_v27 }
 0x12e   :  { %582 = vmatprep.subr.bf16.mxu1 %v2173_v28  ;;  %842 = vmatpush1.bf16.msra.mxu0 %v2209_v53  ;;  %v361_v20 = vrot.slane %v356_v18, %v3075_v11  ;;  %v368_v22 = vrot.slane %v363_v19, %v3075_v11  ;;  %v2269_v53 = vld [vmem:[#allocation14 + $0x80] ss:$8 sps:$4 sm:$0xff]  }
 0x12f   :  { %843 = vmatprep.subr.bf16.mxu0 %v2214_v54  ;;  %v2274_v54 = vld [vmem:[#allocation14 + $0x94] ss:$8 sps:$4 sm:$0xff]  }
 0x131   :  { %583 = vmatpush1.bf16.msra.mxu1 %v2175_v29 }
 0x132   :  { %584 = vmatprep.subr.bf16.mxu1 %v2176_v30  ;;  %844 = vmatpush1.bf16.msra.mxu0 %v2212_v55  ;;  %v2272_v55 = vld [vmem:[#allocation14 + $0x90] ss:$8 sps:$4 sm:$0xff]  }
 0x133   :  { %845 = vmatprep.subr.bf16.mxu0 %v2217_v56  ;;  %v2277_v56 = vld [vmem:[#allocation14 + $0xa4] ss:$8 sps:$4 sm:$0xff]  }
 0x135   :  { %585 = vmatpush1.bf16.msra.mxu1 %v2178_v31 }
 0x136   :  { %586 = vmatprep.subr.bf16.mxu1 %v2179_v32  ;;  %846 = vmatpush1.bf16.msra.mxu0 %v2215_v57  ;;  %v2241_v32 = vld [vmem:[#allocation11 + $0xe4] ss:$8 sps:$4 sm:$0xff]  }
 0x137   :  { %847 = vmatprep.subr.bf16.mxu0 %v2220_v58  ;;  %v2275_v57 = vld [vmem:[#allocation14 + $0xa0] ss:$8 sps:$4 sm:$0xff]   ;;  %v2280_v58 = vld [vmem:[#allocation14 + $0xb4] ss:$8 sps:$4 sm:$0xff]  }
 0x139   :  { %587 = vmatpush1.bf16.msra.mxu1 %v2181_v33  ;;  %v2239_v33 = vld [vmem:[#allocation11 + $0xe0] ss:$8 sps:$4 sm:$0xff]  }
 0x13a   :  { %588 = vmatprep.subr.bf16.mxu1 %v2182_v34  ;;  %848 = vmatpush1.bf16.msra.mxu0 %v2218_v59  ;;  %v2244_v34 = vld [vmem:[#allocation11 + $0xf4] ss:$8 sps:$4 sm:$0xff]  }
 0x13b   :  { %849 = vmatprep.subr.bf16.mxu0 %v2223_v60  ;;  %v2278_v59 = vld [vmem:[#allocation14 + $0xb0] ss:$8 sps:$4 sm:$0xff]   ;;  %v2283_v60 = vld [vmem:[#allocation14 + $0xc4] ss:$8 sps:$4 sm:$0xff]  }
 0x13d   :  { %589 = vmatpush1.bf16.msra.mxu1 %v2184_v35  ;;  %v2242_v35 = vld [vmem:[#allocation11 + $0xf0] ss:$8 sps:$4 sm:$0xff]  }
 0x13e   :  { %590 = vmatprep.subr.bf16.mxu1 %v2185_v36  ;;  %850 = vmatpush1.bf16.msra.mxu0 %v2221_v61  ;;  %v2245_v36 = vld [vmem:[#allocation14] ss:$8 sps:$4 sm:$0xff]  }
 0x13f   :  { %851 = vmatprep.subr.bf16.mxu0 %v2226_v62  ;;  %v2281_v61 = vld [vmem:[#allocation14 + $0xc0] ss:$8 sps:$4 sm:$0xff]   ;;  %v2286_v62 = vld [vmem:[#allocation14 + $0xd4] ss:$8 sps:$4 sm:$0xff]  }
 0x141   :  { %591 = vmatpush1.bf16.msra.mxu1 %v2187_v37  ;;  %v2247_v37 = vld [vmem:[#allocation14 + $0x4] ss:$8 sps:$4 sm:$0xff]  }
 0x142   :  { %592 = vmatprep.subr.bf16.mxu1 %v2188_v38  ;;  %852 = vmatpush1.bf16.msra.mxu0 %v2224_v63  ;;  %v2250_v38 = vld [vmem:[#allocation14 + $0x14] ss:$8 sps:$4 sm:$0xff]   ;;  %v2284_v63 = vld [vmem:[#allocation14 + $0xd0] ss:$8 sps:$4 sm:$0xff]  }
 0x143   :  { %853 = vmatprep.subr.bf16.mxu0 %v2229_v1  ;;  %v405_v1 = vld [vmem:[#allocation10] sm:$0x3] }
 0x145   :  { %593 = vmatpush1.bf16.msra.mxu1 %v2190_v39  ;;  %v2248_v39 = vld [vmem:[#allocation14 + $0x10] ss:$8 sps:$4 sm:$0xff]  }
 0x146   :  { %594 = vmatprep.subr.bf16.mxu1 %v2191_v40  ;;  %854 = vmatpush1.bf16.msra.mxu0 %v2227_v2  ;;  %v2253_v40 = vld [vmem:[#allocation14 + $0x24] ss:$8 sps:$4 sm:$0xff]   ;;  %v613_v2 = vrot.slane %v405_v1, %v3075_v11 }
 0x147   :  { %855 = vmatprep.subr.bf16.mxu0 %v2232_v3  ;;  %v617_v3 = vrot.slane %v405_v1, %v3077_v13 }
 0x149   :  { %595 = vmatpush1.bf16.msra.mxu1 %v2193_v41  ;;  %v2251_v41 = vld [vmem:[#allocation14 + $0x20] ss:$8 sps:$4 sm:$0xff]  }
 0x14a   :  { %596 = vmatprep.subr.bf16.mxu1 %v2194_v42  ;;  %856 = vmatpush1.bf16.msra.mxu0 %v2230_v4  ;;  %v2256_v42 = vld [vmem:[#allocation14 + $0x34] ss:$8 sps:$4 sm:$0xff]   ;;  %v620_v4 = vpack.c.bf16 %v613_v2, %v613_v2 }
 0x14b   :  { %857 = vmatprep.subr.bf16.mxu0 %v2235_v5  ;;  %v621_v5 = vpack.c.bf16 %v617_v3, %v617_v3 }
 0x14d   :  { %597 = vmatpush1.bf16.msra.mxu1 %v2196_v43  ;;  %v2254_v43 = vld [vmem:[#allocation14 + $0x30] ss:$8 sps:$4 sm:$0xff]  }
 0x14e   :  { %858 = vmatpush1.bf16.msra.mxu0 %v2233_v6  ;;  %1100 = vmatprep.subr.bf16.mxu1 %v2247_v37  ;;  %v623_v6 = vpack.i.b16 %v620_v4, %v620_v4  ;;  %v2308_v37 = vld [vmem:[#allocation17 + $0x50] ss:$8 sps:$4 sm:$0xff]  }
 0x14f   :  { %859 = vmatprep.subr.bf16.mxu0 %v2238_v7  ;;  %v630_v7 = vpack.i.b16 %v621_v5, %v621_v5 }
 0x151   :  { %v635_v10 = vrot.slane %v630_v7, %v3075_v11 }
 0x152   :  { %860 = vmatpush1.bf16.msra.mxu0 %v2236_v8  ;;  %v628_v8 = vrot.slane %v623_v6, %v3075_v11 }
 0x153   :  { %861 = vmatprep.subr.bf16.mxu0 %v2241_v32  ;;  %v2304_v32 = vld [vmem:[#allocation17 + $0x34] ss:$8 sps:$4 sm:$0xff]  }
 0x156   :  { %862 = vmatpush1.bf16.msra.mxu0 %v2239_v33  ;;  %v2302_v33 = vld [vmem:[#allocation17 + $0x30] ss:$8 sps:$4 sm:$0xff]  }
 0x157   :  { %863 = vmatprep.subr.bf16.mxu0 %v2244_v34  ;;  %v2307_v34 = vld [vmem:[#allocation17 + $0x44] ss:$8 sps:$4 sm:$0xff]  }
 0x15a   :  { %864 = vmatpush1.bf16.msra.mxu0 %v2242_v35  ;;  %v2305_v35 = vld [vmem:[#allocation17 + $0x40] ss:$8 sps:$4 sm:$0xff]  }
 0x1f0   :  { %v333_v21 = vpop.f32.mrb[0].mxu0 }
 0x1f1   :  { %v340_v23 = vpack.c.bf16 %v333_v21, %v333_v21  ;;  %v335_v24 = vpop.f32.mrb[1].mxu0 }
 0x1f2   :  { %v341_v25 = vpack.c.bf16 %v335_v24, %v335_v24  ;;  %v337_v26 = vpop.f32.mrb[2].mxu0  ;;  %v2292_v24 = vld [vmem:[#allocation14 + $0xf4] ss:$8 sps:$4 sm:$0xff]  }
 0x1f3   :  { %v369_v27 = vadd.bf16 %v361_v20, %v340_v23  ;;  %v338_v28 = vpop.f32.mrb[3].mxu0  ;;  %v2287_v23 = vld [vmem:[#allocation14 + $0xe0] ss:$8 sps:$4 sm:$0xff]  }
 0x1f4   :  { %v370_v29 = vadd.bf16 %v368_v22, %v341_v25  ;;  %v2289_v22 = vld [vmem:[#allocation14 + $0xe4] ss:$8 sps:$4 sm:$0xff]   ;;  %v2290_v25 = vld [vmem:[#allocation14 + $0xf0] ss:$8 sps:$4 sm:$0xff]  }
 0x1f5   :  { %v371_v31 = vmax.bf16 %v2794_v0, %v369_v27  ;;  %v2293_v26 = vld [vmem:[#allocation17] ss:$8 sps:$4 sm:$0xff]   ;;  %v2295_v27 = vld [vmem:[#allocation17 + $0x4] ss:$8 sps:$4 sm:$0xff]   ;;  %v2298_v28 = vld [vmem:[#allocation17 + $0x14] ss:$8 sps:$4 sm:$0xff]  }
 0x1f6   :  { %v372_v30 = vmax.bf16 %v2794_v0, %v370_v29  ;;  %1367 = vmatprep.subr.bf16.mxu0 %v2295_v27  ;;  %v2296_v29 = vld [vmem:[#allocation17 + $0x10] ss:$8 sps:$4 sm:$0xff]  }
 0x1f7   :  { %v2356_v27 = vld [vmem:[#allocation20 + $0x50] ss:$8 sps:$4 sm:$0xff]  }
 0x1f8   :  { %598 = vmatprep.mubr.bf16.mxu1 %v372_v30  ;;  %v2301_v30 = vld [vmem:[#allocation17 + $0x24] ss:$8 sps:$4 sm:$0xff]  }
 0x1f9   :  { %599 = vmatmul.mubr.bf16.vlgmr.msra.gmra.mrb[0].mxu1 %v371_v31  ;;  %v2299_v31 = vld [vmem:[#allocation17 + $0x20] ss:$8 sps:$4 sm:$0xff]  }
 0x1fa   :  { %1101 = vmatpush1.bf16.msra.mxu1 %v2245_v36  ;;  %v2310_v36 = vld [vmem:[#allocation17 + $0x54] ss:$8 sps:$4 sm:$0xff]  }
 0x1fb   :  { %1102 = vmatprep.subr.bf16.mxu1 %v2250_v38  ;;  %v2313_v38 = vld [vmem:[#allocation17 + $0x64] ss:$8 sps:$4 sm:$0xff]  }
 0x1fe   :  { %1103 = vmatpush1.bf16.msra.mxu1 %v2248_v39  ;;  %v2311_v39 = vld [vmem:[#allocation17 + $0x60] ss:$8 sps:$4 sm:$0xff]  }
 0x1ff   :  { %1104 = vmatprep.subr.bf16.mxu1 %v2253_v40  ;;  %v2316_v40 = vld [vmem:[#allocation17 + $0x74] ss:$8 sps:$4 sm:$0xff]  }
 0x202   :  { %1105 = vmatpush1.bf16.msra.mxu1 %v2251_v41  ;;  %v2314_v41 = vld [vmem:[#allocation17 + $0x70] ss:$8 sps:$4 sm:$0xff]  }
 0x203   :  { %1106 = vmatprep.subr.bf16.mxu1 %v2256_v42  ;;  %v2319_v42 = vld [vmem:[#allocation17 + $0x84] ss:$8 sps:$4 sm:$0xff]  }
 0x206   :  { %1107 = vmatpush1.bf16.msra.mxu1 %v2254_v43  ;;  %v2317_v43 = vld [vmem:[#allocation17 + $0x80] ss:$8 sps:$4 sm:$0xff]  }
 0x207   :  { %1108 = vmatprep.subr.bf16.mxu1 %v2259_v44  ;;  %v2322_v44 = vld [vmem:[#allocation17 + $0x94] ss:$8 sps:$4 sm:$0xff]  }
 0x20a   :  { %1109 = vmatpush1.bf16.msra.mxu1 %v2257_v45  ;;  %v2320_v45 = vld [vmem:[#allocation17 + $0x90] ss:$8 sps:$4 sm:$0xff]  }
 0x20b   :  { %1110 = vmatprep.subr.bf16.mxu1 %v2262_v46  ;;  %v2325_v46 = vld [vmem:[#allocation17 + $0xa4] ss:$8 sps:$4 sm:$0xff]  }
 0x20e   :  { %1111 = vmatpush1.bf16.msra.mxu1 %v2260_v47  ;;  %v2323_v47 = vld [vmem:[#allocation17 + $0xa0] ss:$8 sps:$4 sm:$0xff]  }
 0x20f   :  { %1112 = vmatprep.subr.bf16.mxu1 %v2265_v48  ;;  %v2328_v48 = vld [vmem:[#allocation17 + $0xb4] ss:$8 sps:$4 sm:$0xff]  }
 0x212   :  { %1113 = vmatpush1.bf16.msra.mxu1 %v2263_v49  ;;  %v2326_v49 = vld [vmem:[#allocation17 + $0xb0] ss:$8 sps:$4 sm:$0xff]  }
 0x213   :  { %1114 = vmatprep.subr.bf16.mxu1 %v2268_v50  ;;  %v2331_v50 = vld [vmem:[#allocation17 + $0xc4] ss:$8 sps:$4 sm:$0xff]  }
 0x216   :  { %1115 = vmatpush1.bf16.msra.mxu1 %v2266_v51  ;;  %v2329_v51 = vld [vmem:[#allocation17 + $0xc0] ss:$8 sps:$4 sm:$0xff]  }
 0x217   :  { %1116 = vmatprep.subr.bf16.mxu1 %v2271_v52  ;;  %v2334_v52 = vld [vmem:[#allocation17 + $0xd4] ss:$8 sps:$4 sm:$0xff]  }
 0x21a   :  { %1117 = vmatpush1.bf16.msra.mxu1 %v2269_v53  ;;  %v2332_v53 = vld [vmem:[#allocation17 + $0xd0] ss:$8 sps:$4 sm:$0xff]  }
 0x21b   :  { %1118 = vmatprep.subr.bf16.mxu1 %v2274_v54  ;;  %v672_v54 = vld [vmem:[#allocation13] sm:$0x3] }
 0x21e   :  { %1119 = vmatpush1.bf16.msra.mxu1 %v2272_v55  ;;  %v880_v55 = vrot.slane %v672_v54, %v3075_v11 }
 0x21f   :  { %1120 = vmatprep.subr.bf16.mxu1 %v2277_v56  ;;  %v884_v56 = vrot.slane %v672_v54, %v3077_v13 }
 0x222   :  { %1121 = vmatpush1.bf16.msra.mxu1 %v2275_v57  ;;  %v887_v57 = vpack.c.bf16 %v880_v55, %v880_v55 }
 0x223   :  { %1122 = vmatprep.subr.bf16.mxu1 %v2280_v58  ;;  %v888_v58 = vpack.c.bf16 %v884_v56, %v884_v56 }
 0x226   :  { %1123 = vmatpush1.bf16.msra.mxu1 %v2278_v59  ;;  %v890_v59 = vpack.i.b16 %v887_v57, %v887_v57 }
 0x227   :  { %1124 = vmatprep.subr.bf16.mxu1 %v2283_v60  ;;  %v897_v60 = vpack.i.b16 %v888_v58, %v888_v58 }
 0x22a   :  { %1125 = vmatpush1.bf16.msra.mxu1 %v2281_v61  ;;  %v895_v61 = vrot.slane %v890_v59, %v3075_v11 }
 0x22b   :  { %1126 = vmatprep.subr.bf16.mxu1 %v2286_v62 }
 0x22e   :  { %1127 = vmatpush1.bf16.msra.mxu1 %v2284_v63  ;;  %v902_v63 = vrot.slane %v897_v60, %v3075_v11 }
 0x22f   :  { %1128 = vmatprep.subr.bf16.mxu1 %v2289_v22  ;;  %v2352_v22 = vld [vmem:[#allocation20 + $0x34] ss:$8 sps:$4 sm:$0xff]  }
 0x232   :  { %1129 = vmatpush1.bf16.msra.mxu1 %v2287_v23  ;;  %v2350_v23 = vld [vmem:[#allocation20 + $0x30] ss:$8 sps:$4 sm:$0xff]  }
 0x233   :  { %1130 = vmatprep.subr.bf16.mxu1 %v2292_v24  ;;  %v2355_v24 = vld [vmem:[#allocation20 + $0x44] ss:$8 sps:$4 sm:$0xff]  }
 0x236   :  { %1131 = vmatpush1.bf16.msra.mxu1 %v2290_v25  ;;  %v2353_v25 = vld [vmem:[#allocation20 + $0x40] ss:$8 sps:$4 sm:$0xff]  }
 0x2cc   :  { %v600_v9 = vpop.f32.mrb[0].mxu1 }
 0x2cd   :  { %v607_v12 = vpack.c.bf16 %v600_v9, %v600_v9  ;;  %v602_v14 = vpop.f32.mrb[1].mxu1 }
 0x2ce   :  { %v608_v15 = vpack.c.bf16 %v602_v14, %v602_v14  ;;  %v604_v16 = vpop.f32.mrb[2].mxu1  ;;  %v2340_v14 = vld [vmem:[#allocation17 + $0xf4] ss:$8 sps:$4 sm:$0xff]  }
 0x2cf   :  { %v636_v17 = vadd.bf16 %v628_v8, %v607_v12  ;;  %v605_v18 = vpop.f32.mrb[3].mxu1  ;;  %v2335_v12 = vld [vmem:[#allocation17 + $0xe0] ss:$8 sps:$4 sm:$0xff]  }
 0x2d0   :  { %v637_v19 = vadd.bf16 %v635_v10, %v608_v15  ;;  %v2337_v10 = vld [vmem:[#allocation17 + $0xe4] ss:$8 sps:$4 sm:$0xff]   ;;  %v2338_v15 = vld [vmem:[#allocation17 + $0xf0] ss:$8 sps:$4 sm:$0xff]  }
 0x2d1   :  { %v638_v21 = vmax.bf16 %v2794_v0, %v636_v17  ;;  %v2341_v16 = vld [vmem:[#allocation20] ss:$8 sps:$4 sm:$0xff]   ;;  %v2343_v17 = vld [vmem:[#allocation20 + $0x4] ss:$8 sps:$4 sm:$0xff]   ;;  %v2346_v18 = vld [vmem:[#allocation20 + $0x14] ss:$8 sps:$4 sm:$0xff]  }
 0x2d2   :  { %v639_v20 = vmax.bf16 %v2794_v0, %v637_v19  ;;  %1634 = vmatprep.subr.bf16.mxu1 %v2343_v17  ;;  %v2344_v19 = vld [vmem:[#allocation20 + $0x10] ss:$8 sps:$4 sm:$0xff]  }
 0x2d3   :  { %v2400_v17 = vld [vmem:[#allocation23 + $0x28] sm:$0xff]  }
 0x2d4   :  { %865 = vmatprep.mubr.bf16.mxu0 %v639_v20  ;;  %v2349_v20 = vld [vmem:[#allocation20 + $0x24] ss:$8 sps:$4 sm:$0xff]  }
 0x2d5   :  { %866 = vmatmul.mubr.bf16.vlgmr.msra.gmra.mrb[4].mxu0 %v638_v21  ;;  %v2347_v21 = vld [vmem:[#allocation20 + $0x20] ss:$8 sps:$4 sm:$0xff]  }
 0x2d6   :  { %1368 = vmatpush1.bf16.msra.mxu0 %v2293_v26  ;;  %v2358_v26 = vld [vmem:[#allocation20 + $0x54] ss:$8 sps:$4 sm:$0xff]  }
 0x2d7   :  { %1369 = vmatprep.subr.bf16.mxu0 %v2298_v28  ;;  %v2361_v28 = vld [vmem:[#allocation20 + $0x64] ss:$8 sps:$4 sm:$0xff]  }
 0x2da   :  { %1370 = vmatpush1.bf16.msra.mxu0 %v2296_v29  ;;  %v2359_v29 = vld [vmem:[#allocation20 + $0x60] ss:$8 sps:$4 sm:$0xff]  }
 0x2db   :  { %1371 = vmatprep.subr.bf16.mxu0 %v2301_v30  ;;  %v2364_v30 = vld [vmem:[#allocation20 + $0x74] ss:$8 sps:$4 sm:$0xff]  }
 0x2de   :  { %1372 = vmatpush1.bf16.msra.mxu0 %v2299_v31  ;;  %v2362_v31 = vld [vmem:[#allocation20 + $0x70] ss:$8 sps:$4 sm:$0xff]  }
 0x2df   :  { %1373 = vmatprep.subr.bf16.mxu0 %v2304_v32  ;;  %v2367_v32 = vld [vmem:[#allocation20 + $0x84] ss:$8 sps:$4 sm:$0xff]  }
 0x2e2   :  { %1374 = vmatpush1.bf16.msra.mxu0 %v2302_v33  ;;  %v2365_v33 = vld [vmem:[#allocation20 + $0x80] ss:$8 sps:$4 sm:$0xff]  }
 0x2e3   :  { %1375 = vmatprep.subr.bf16.mxu0 %v2307_v34  ;;  %v2370_v34 = vld [vmem:[#allocation20 + $0x94] ss:$8 sps:$4 sm:$0xff]  }
 0x2e6   :  { %1376 = vmatpush1.bf16.msra.mxu0 %v2305_v35  ;;  %v2368_v35 = vld [vmem:[#allocation20 + $0x90] ss:$8 sps:$4 sm:$0xff]  }
 0x2e7   :  { %1377 = vmatprep.subr.bf16.mxu0 %v2310_v36  ;;  %v2373_v36 = vld [vmem:[#allocation20 + $0xa4] ss:$8 sps:$4 sm:$0xff]  }
 0x2ea   :  { %1378 = vmatpush1.bf16.msra.mxu0 %v2308_v37  ;;  %v2371_v37 = vld [vmem:[#allocation20 + $0xa0] ss:$8 sps:$4 sm:$0xff]  }
 0x2eb   :  { %1379 = vmatprep.subr.bf16.mxu0 %v2313_v38  ;;  %v2376_v38 = vld [vmem:[#allocation20 + $0xb4] ss:$8 sps:$4 sm:$0xff]  }
 0x2ee   :  { %1380 = vmatpush1.bf16.msra.mxu0 %v2311_v39  ;;  %v2374_v39 = vld [vmem:[#allocation20 + $0xb0] ss:$8 sps:$4 sm:$0xff]  }
 0x2ef   :  { %1381 = vmatprep.subr.bf16.mxu0 %v2316_v40  ;;  %v2379_v40 = vld [vmem:[#allocation20 + $0xc4] ss:$8 sps:$4 sm:$0xff]  }
 0x2f2   :  { %1382 = vmatpush1.bf16.msra.mxu0 %v2314_v41  ;;  %v2377_v41 = vld [vmem:[#allocation20 + $0xc0] ss:$8 sps:$4 sm:$0xff]  }
 0x2f3   :  { %1383 = vmatprep.subr.bf16.mxu0 %v2319_v42  ;;  %v2382_v42 = vld [vmem:[#allocation20 + $0xd4] ss:$8 sps:$4 sm:$0xff]  }
 0x2f6   :  { %1384 = vmatpush1.bf16.msra.mxu0 %v2317_v43  ;;  %v2380_v43 = vld [vmem:[#allocation20 + $0xd0] ss:$8 sps:$4 sm:$0xff]  }
 0x2f7   :  { %1385 = vmatprep.subr.bf16.mxu0 %v2322_v44  ;;  %v939_v44 = vld [vmem:[#allocation16] sm:$0x3] }
 0x2fa   :  { %1386 = vmatpush1.bf16.msra.mxu0 %v2320_v45  ;;  %v1147_v45 = vrot.slane %v939_v44, %v3075_v11 }
 0x2fb   :  { %1387 = vmatprep.subr.bf16.mxu0 %v2325_v46  ;;  %v1151_v46 = vrot.slane %v939_v44, %v3077_v13 }
 0x2fe   :  { %1388 = vmatpush1.bf16.msra.mxu0 %v2323_v47  ;;  %v1154_v47 = vpack.c.bf16 %v1147_v45, %v1147_v45 }
 0x2ff   :  { %1389 = vmatprep.subr.bf16.mxu0 %v2328_v48  ;;  %v1155_v48 = vpack.c.bf16 %v1151_v46, %v1151_v46 }
 0x302   :  { %1390 = vmatpush1.bf16.msra.mxu0 %v2326_v49  ;;  %v1157_v49 = vpack.i.b16 %v1154_v47, %v1154_v47 }
 0x303   :  { %1391 = vmatprep.subr.bf16.mxu0 %v2331_v50  ;;  %v1164_v50 = vpack.i.b16 %v1155_v48, %v1155_v48 }
 0x306   :  { %1392 = vmatpush1.bf16.msra.mxu0 %v2329_v51  ;;  %v1162_v51 = vrot.slane %v1157_v49, %v3075_v11 }
 0x307   :  { %1393 = vmatprep.subr.bf16.mxu0 %v2334_v52 }
 0x30a   :  { %1394 = vmatpush1.bf16.msra.mxu0 %v2332_v53  ;;  %v1169_v53 = vrot.slane %v1164_v50, %v3075_v11 }
 0x30b   :  { %1395 = vmatprep.subr.bf16.mxu0 %v2337_v10  ;;  %v2395_v10 = vld [vmem:[#allocation23 + $0x58] sm:$0xff]  }
 0x30e   :  { %1396 = vmatpush1.bf16.msra.mxu0 %v2335_v12  ;;  %v2396_v12 = vld [vmem:[#allocation23 + $0x18] sm:$0xff]  }
 0x30f   :  { %1397 = vmatprep.subr.bf16.mxu0 %v2340_v14  ;;  %v2397_v14 = vld [vmem:[#allocation23 + $0x60] sm:$0xff]  }
 0x312   :  { %1398 = vmatpush1.bf16.msra.mxu0 %v2338_v15  ;;  %v2398_v15 = vld [vmem:[#allocation23 + $0x20] sm:$0xff]  }
 0x3a8   :  { %v867_v62 = vpop.f32.mrb[4].mxu0 }
 0x3a9   :  { %v874_v1 = vpack.c.bf16 %v867_v62, %v867_v62  ;;  %v869_v2 = vpop.f32.mrb[5].mxu0 }
 0x3aa   :  { %v875_v3 = vpack.c.bf16 %v869_v2, %v869_v2  ;;  %v871_v4 = vpop.f32.mrb[6].mxu0  ;;  %v2388_v2 = vld [vmem:[#allocation20 + $0xf4] ss:$8 sps:$4 sm:$0xff]  }
 0x3ab   :  { %v903_v5 = vadd.bf16 %v895_v61, %v874_v1  ;;  %v872_v6 = vpop.f32.mrb[7].mxu0  ;;  %v2383_v1 = vld [vmem:[#allocation20 + $0xe0] ss:$8 sps:$4 sm:$0xff]  }
 0x3ac   :  { %v904_v7 = vadd.bf16 %v902_v63, %v875_v3  ;;  %v2385_v63 = vld [vmem:[#allocation20 + $0xe4] ss:$8 sps:$4 sm:$0xff]   ;;  %v2386_v3 = vld [vmem:[#allocation20 + $0xf0] ss:$8 sps:$4 sm:$0xff]  }
 0x3ad   :  { %v905_v9 = vmax.bf16 %v2794_v0, %v903_v5  ;;  %v2389_v4 = vld [vmem:[#allocation23 + $0x40] sm:$0xff]   ;;  %v2391_v6 = vld [vmem:[#allocation23 + $0x48] sm:$0xff]  }
 0x3ae   :  { %v906_v8 = vmax.bf16 %v2794_v0, %v904_v7  ;;  %v2390_v5 = vld [vmem:[#allocation23] sm:$0xff]   ;;  %2094 = vmatprep.subr.bf16.mxu0 %v2389_v4  ;;  %v2392_v7 = vld [vmem:[#allocation23 + $0x8] sm:$0xff]  }
 0x3b0   :  { %1132 = vmatprep.mubr.bf16.mxu1 %v906_v8  ;;  %v2393_v8 = vld [vmem:[#allocation23 + $0x50] sm:$0xff]  }
 0x3b1   :  { %1133 = vmatmul.mubr.bf16.vlgmr.msra.gmra.mrb[4].mxu1 %v905_v9  ;;  %v2394_v9 = vld [vmem:[#allocation23 + $0x10] sm:$0xff]  }
 0x3b2   :  { %1635 = vmatpush1.bf16.msra.mxu1 %v2341_v16  ;;  %v2399_v16 = vld [vmem:[#allocation23 + $0x68] sm:$0xff]  }
 0x3b3   :  { %1636 = vmatprep.subr.bf16.mxu1 %v2346_v18  ;;  %v1206_v18 = vld [vmem:[#allocation19] sm:$0x3] }
 0x3b6   :  { %1637 = vmatpush1.bf16.msra.mxu1 %v2344_v19  ;;  %v1414_v19 = vrot.slane %v1206_v18, %v3075_v11 }
 0x3b7   :  { %1638 = vmatprep.subr.bf16.mxu1 %v2349_v20  ;;  %v1418_v20 = vrot.slane %v1206_v18, %v3077_v13 }
 0x3ba   :  { %1639 = vmatpush1.bf16.msra.mxu1 %v2347_v21  ;;  %v1421_v21 = vpack.c.bf16 %v1414_v19, %v1414_v19 }
 0x3bb   :  { %1640 = vmatprep.subr.bf16.mxu1 %v2352_v22  ;;  %v1422_v22 = vpack.c.bf16 %v1418_v20, %v1418_v20 }
 0x3be   :  { %1641 = vmatpush1.bf16.msra.mxu1 %v2350_v23  ;;  %v1424_v23 = vpack.i.b16 %v1421_v21, %v1421_v21 }
 0x3bf   :  { %1642 = vmatprep.subr.bf16.mxu1 %v2355_v24  ;;  %v1431_v24 = vpack.i.b16 %v1422_v22, %v1422_v22 }
 0x3c2   :  { %1643 = vmatpush1.bf16.msra.mxu1 %v2353_v25  ;;  %v1429_v25 = vrot.slane %v1424_v23, %v3075_v11 }
 0x3c3   :  { %1644 = vmatprep.subr.bf16.mxu1 %v2358_v26 }
 0x3c6   :  { %1645 = vmatpush1.bf16.msra.mxu1 %v2356_v27  ;;  %v1436_v27 = vrot.slane %v1431_v24, %v3075_v11 }
 0x3c7   :  { %1646 = vmatprep.subr.bf16.mxu1 %v2361_v28 }
 0x3ca   :  { %1647 = vmatpush1.bf16.msra.mxu1 %v2359_v29 }
 0x3cb   :  { %1648 = vmatprep.subr.bf16.mxu1 %v2364_v30 }
 0x3ce   :  { %1649 = vmatpush1.bf16.msra.mxu1 %v2362_v31 }
 0x3cf   :  { %1650 = vmatprep.subr.bf16.mxu1 %v2367_v32 }
 0x3d2   :  { %1651 = vmatpush1.bf16.msra.mxu1 %v2365_v33 }
 0x3d3   :  { %1652 = vmatprep.subr.bf16.mxu1 %v2370_v34 }
 0x3d6   :  { %1653 = vmatpush1.bf16.msra.mxu1 %v2368_v35 }
 0x3d7   :  { %1654 = vmatprep.subr.bf16.mxu1 %v2373_v36 }
 0x3da   :  { %1655 = vmatpush1.bf16.msra.mxu1 %v2371_v37  ;;  %v2401_v37 = vld [vmem:[#allocation23 + $0x70] sm:$0xff]  }
 0x3db   :  { %1656 = vmatprep.subr.bf16.mxu1 %v2376_v38  ;;  %v2402_v38 = vld [vmem:[#allocation23 + $0x30] sm:$0xff]  }
 0x3de   :  { %1657 = vmatpush1.bf16.msra.mxu1 %v2374_v39  ;;  %v2403_v39 = vld [vmem:[#allocation23 + $0x78] sm:$0xff]  }
 0x3df   :  { %1658 = vmatprep.subr.bf16.mxu1 %v2379_v40  ;;  %v2404_v40 = vld [vmem:[#allocation23 + $0x38] sm:$0xff]  }
 0x3e2   :  { %1659 = vmatpush1.bf16.msra.mxu1 %v2377_v41  ;;  %v1473_v41 = vld [vmem:[#allocation22] sm:$0x3] }
 0x3e3   :  { %1660 = vmatprep.subr.bf16.mxu1 %v2382_v42  ;;  %v1681_v42 = vrot.slane %v1473_v41, %v3075_v11 }
 0x3e5   :  { %v1688_v44 = vpack.c.bf16 %v1681_v42, %v1681_v42 }
 0x3e6   :  { %1661 = vmatpush1.bf16.msra.mxu1 %v2380_v43  ;;  %v1685_v43 = vrot.slane %v1473_v41, %v3077_v13 }
 0x3e7   :  { %1662 = vmatprep.subr.bf16.mxu1 %v2385_v63  ;;  %v1691_v46 = vpack.i.b16 %v1688_v44, %v1688_v44 }
 0x3e8   :  { %v1689_v45 = vpack.c.bf16 %v1685_v43, %v1685_v43 }
 0x3e9   :  { %v1696_v48 = vrot.slane %v1691_v46, %v3075_v11 }
 0x3ea   :  { %1663 = vmatpush1.bf16.msra.mxu1 %v2383_v1  ;;  %v1698_v47 = vpack.i.b16 %v1689_v45, %v1689_v45 }
 0x3eb   :  { %1664 = vmatprep.subr.bf16.mxu1 %v2388_v2 }
 0x3ec   :  { %v1703_v50 = vrot.slane %v1698_v47, %v3075_v11 }
 0x3ee   :  { %1665 = vmatpush1.bf16.msra.mxu1 %v2386_v3 }
 0x484   :  { %v1134_v52 = vpop.f32.mrb[4].mxu1 }
 0x485   :  { %v1141_v54 = vpack.c.bf16 %v1134_v52, %v1134_v52  ;;  %v1136_v55 = vpop.f32.mrb[5].mxu1 }
 0x486   :  { %v1142_v56 = vpack.c.bf16 %v1136_v55, %v1136_v55  ;;  %v1138_v57 = vpop.f32.mrb[6].mxu1 }
 0x487   :  { %v1170_v58 = vadd.bf16 %v1162_v51, %v1141_v54  ;;  %v1139_v59 = vpop.f32.mrb[7].mxu1 }
 0x488   :  { %v1171_v60 = vadd.bf16 %v1169_v53, %v1142_v56 }
 0x489   :  { %v1172_v62 = vmax.bf16 %v2794_v0, %v1170_v58 }
 0x48a   :  { %v1173_v61 = vmax.bf16 %v2794_v0, %v1171_v60  ;;  %v2077_v60 = vld [vmem:[#allocation25] ss:$0 sm:$0xff] }
 0x48c   :  { %1399 = vmatprep.mubr.bf16.mxu0 %v1173_v61 }
 0x48d   :  { %1400 = vmatmul.mubr.bf16.vlgmr.msra.gmra.mrb[8].mxu0 %v1172_v62 }
 0x48e   :  { %2095 = vmatpush3.bf16.msra.mxu0 %v2390_v5 }
 0x48f   :  { %2096 = vmatprep.subr.bf16.mxu0 %v2391_v6 }
 0x492   :  { %2097 = vmatpush3.bf16.msra.mxu0 %v2392_v7 }
 0x493   :  { %2098 = vmatprep.subr.bf16.mxu0 %v2393_v8 }
 0x496   :  { %2099 = vmatpush3.bf16.msra.mxu0 %v2394_v9 }
 0x497   :  { %2100 = vmatprep.subr.bf16.mxu0 %v2395_v10 }
 0x49a   :  { %2101 = vmatpush3.bf16.msra.mxu0 %v2396_v12 }
 0x49b   :  { %2102 = vmatprep.subr.bf16.mxu0 %v2397_v14 }
 0x49e   :  { %2103 = vmatpush3.bf16.msra.mxu0 %v2398_v15 }
 0x49f   :  { %2104 = vmatprep.subr.bf16.mxu0 %v2399_v16 }
 0x4a2   :  { %2105 = vmatpush3.bf16.msra.mxu0 %v2400_v17 }
 0x4a3   :  { %2106 = vmatprep.subr.bf16.mxu0 %v2401_v37 }
 0x4a6   :  { %2107 = vmatpush3.bf16.msra.mxu0 %v2402_v38 }
 0x4a7   :  { %2108 = vmatprep.subr.bf16.mxu0 %v2403_v39 }
 0x4aa   :  { %2109 = vmatpush3.bf16.msra.mxu0 %v2404_v40 }
 0x560   :  { %v1401_v26 = vpop.f32.mrb[8].mxu0 }
 0x561   :  { %v1408_v28 = vpack.c.bf16 %v1401_v26, %v1401_v26  ;;  %v1403_v29 = vpop.f32.mrb[9].mxu0 }
 0x562   :  { %v1409_v30 = vpack.c.bf16 %v1403_v29, %v1403_v29  ;;  %v1405_v31 = vpop.f32.mrb[10].mxu0 }
 0x563   :  { %v1437_v32 = vadd.bf16 %v1429_v25, %v1408_v28  ;;  %v1406_v33 = vpop.f32.mrb[11].mxu0 }
 0x564   :  { %v1438_v34 = vadd.bf16 %v1436_v27, %v1409_v30 }
 0x565   :  { %v1439_v36 = vmax.bf16 %v2794_v0, %v1437_v32 }
 0x566   :  { %v1440_v35 = vmax.bf16 %v2794_v0, %v1438_v34 }
 0x568   :  { %1666 = vmatprep.mubr.bf16.mxu1 %v1440_v35 }
 0x569   :  { %1667 = vmatmul.mubr.bf16.vlgmr.msra.gmra.mrb[8].mxu1 %v1439_v36 }
 0x63c   :  { %v1668_v49 = vpop.f32.mrb[8].mxu1 }
 0x63d   :  { %v1675_v51 = vpack.c.bf16 %v1668_v49, %v1668_v49  ;;  %v1670_v52 = vpop.f32.mrb[9].mxu1 }
 0x63e   :  { %v1676_v53 = vpack.c.bf16 %v1670_v52, %v1670_v52  ;;  %v1672_v54 = vpop.f32.mrb[10].mxu1 }
 0x63f   :  { %v1704_v55 = vadd.bf16 %v1696_v48, %v1675_v51  ;;  %v1673_v56 = vpop.f32.mrb[11].mxu1 }
 0x640   :  { %v1705_v57 = vadd.bf16 %v1703_v50, %v1676_v53 }
 0x641   :  { %v1706_v13 = vmax.bf16 %v2794_v0, %v1704_v55 }
 0x642   :  { %v1707_v58 = vmax.bf16 %v2794_v0, %v1705_v57 }
 0x644   :  { %1875 = vmatprep.mubr.bf16.mxu0 %v1707_v58 }
 0x645   :  { %1876 = vmatmul.mubr.bf16.vlgmr.msra.gmra.mrb[12].mxu0 %v1706_v13 }
 0x718   :  { %v2110_v59 = vpop.f32.mrb[12].mxu0 }
 0x719   :  { %v2111_v61 = vpop.f32.mrb[13].mxu0 }
 0x71a   :  { %v2112_v62 = vadd.f32 %v2111_v61, %v2110_v59  ;;  %v2113_v11 = vpop.f32.mrb[14].mxu0 }
 0x71b   :  { %v2114_v63 = vpop.f32.mrb[15].mxu0 }
 0x71c   :  { %v1878_v1 = vadd.f32 %v2112_v62, %v2077_v60 }
 0x71e   :  { %1884 = vst.msk [vmem:[#allocation26] sm:$0xff] %vm1883_vm2, %v1878_v1 }
 0x71f   :  { %2746 = shalt.err (!%p2743_p12)
}
 0x720   :  { %s3145_s5 = sld [smem:[#allocation36_spill]] }
 0x726   :  { %s2747_s11 = scalar_lea.hbm %s3145_s5, 128 }
 0x727   :  { %p2748_p13 = scmp.ne.s32.totalorder %s3145_s5, %s2747_s11  ;;  %p2751_p0 = scmp.lt.u32.totalorder %s2747_s11, %s3145_s5 }
 0x729   :  { %p2753_p1 = pnand %p2751_p0, %p2748_p13 }
 0x72b   :  { %2756 = shalt.err (!%p2753_p1)
}
 0x72c   :  { %1894 = dma.vmem_to_hbm [thread:$0]  %s1892_s27, 128, %s3145_s5, [#allocation4]  }
 0x72d   :  { %2773 = dma.done.wait [#allocation4], 128  }
 0x72e   :  { %2774 = vsyncadd [#allocation4], 4294967168 }
 0x72f   :  { %1898 = vsyncpa [#allocation3], 1 }
 0x730   :  { %1899 = vsyncpa [#allocation6], 1 }
 0x731   :  { %1900 = vsyncpa [#allocation9], 1 }
 0x732   :  { %1901 = vsyncpa [#allocation12], 1 }
 0x733   :  { %1902 = vsyncpa [#allocation15], 1 }
 0x734   :  { %1903 = vsyncpa [#allocation18], 1 }
 0x735   :  { %1904 = vsyncpa [#allocation21], 1 }
 0x736   :  { %1905 = vsyncpa [#allocation24], 1 }
 0x737   :  { %1906 = vsyncpa [#allocation4], 1 }

</bundles_post_ra>
